<compile_context>
chip_gen: v5e
topology: v5e:2x2
jax: 0.10.0
libtpu: 0.0.40
codegen_flags: <defaults>
</compile_context>

<pallas_src>
import jax
import jax.numpy as jnp
from jax.experimental import pallas as pl
from jax.experimental.pallas import tpu as pltpu


def _vmem_cap_bytes():
    """Per-generation safe VMEM request (leave headroom for Mosaic scratch)."""
    try:
        kind = jax.devices()[0].device_kind.lower()
    except Exception:
        kind = ""
    if "v7" in kind:
        return 48 << 20       # v7x: 64 MiB physical per TC
    return 100 << 20          # v5e / v6e: 128 MiB physical


def _pick_divisor(total, want, align=128):
    """Largest t <= want dividing `total`, preferring lane-aligned t."""
    want = max(1, min(want, total))
    for t in range(want, 0, -1):
        if total % t == 0 and t % align == 0:
            return t
    for t in range(want, 0, -1):
        if total % t == 0:
            return t
    return total


# ----------------------------------------------------------------------------
# Path A: weights fully VMEM-resident, single grid axis over rows (M).
# ----------------------------------------------------------------------------
def _cm_resident_kernel(xk_ref, xr_ref, wk_ref, wv_ref, wr_ref, o_ref):
    # xk/xr: (TILE_M, C) bf16 (mix precomputed in wrapper);
    # wk: (C, H), wv: (H, C), wr: (C, C) bf16 -- constant-index resident blocks.
    k = jnp.dot(xk_ref[...], wk_ref[...], preferred_element_type=jnp.float32)
    k = jnp.square(jnp.maximum(k, 0.0))
    kv = jnp.dot(k.astype(jnp.bfloat16), wv_ref[...],
                 preferred_element_type=jnp.float32)
    r = jax.nn.sigmoid(jnp.dot(xr_ref[...], wr_ref[...],
                               preferred_element_type=jnp.float32))
    o_ref[...] = (r * kv).astype(o_ref.dtype)


# ----------------------------------------------------------------------------
# Path B: large-C fallback -- tile the hidden axis H, accumulate kv in f32.
# ----------------------------------------------------------------------------
def _cm_tiled_kernel(xk_ref, xr_ref, wk_ref, wv_ref, wr_ref, o_ref, acc_ref):
    h = pl.program_id(1)

    @pl.when(h == 0)
    def _init():
        acc_ref[...] = jnp.zeros_like(acc_ref)

    k = jnp.dot(xk_ref[...], wk_ref[...], preferred_element_type=jnp.float32)
    k = jnp.square(jnp.maximum(k, 0.0))
    acc_ref[...] += jnp.dot(k.astype(jnp.bfloat16), wv_ref[...],
                            preferred_element_type=jnp.float32)

    @pl.when(h == pl.num_programs(1) - 1)
    def _finalize():
        r = jax.nn.sigmoid(jnp.dot(xr_ref[...], wr_ref[...],
                                   preferred_element_type=jnp.float32))
        o_ref[...] = (r * acc_ref[...]).astype(o_ref.dtype)
        # TODO(synk): for C >= ~4096 on v7x the resident wr block itself may not
        # fit 64 MiB VMEM; would need an extra output-N tiling for this matmul.


def rwkv_channel_mix(x, time_mix_k, time_mix_r, w_key, w_receptance, w_value,
                     *, tile_m=256, tile_h=512):
    """x: (B, T, C); time_mix_*: broadcastable to (1, 1, C); w_key: (C, 4C);
    w_receptance: (C, C); w_value: (4C, C).  Returns (B, T, C)."""
    B, T, C = x.shape
    H = w_key.shape[1]
    out_dtype = x.dtype

    # Time shift (ZeroPad2d((0,0,1,-1))): xx[:, t] = x[:, t-1], xx[:, 0] = 0.
    x32 = x.astype(jnp.float32)
    xx = jnp.pad(x32, ((0, 0), (1, 0), (0, 0)))[:, :-1, :]
    delta = x32 - xx
    tmk = time_mix_k.reshape(1, 1, C).astype(jnp.float32)
    tmr = time_mix_r.reshape(1, 1, C).astype(jnp.float32)
    # Precompute mixes once (fused XLA elementwise) and ship bf16: halves the
    # activation DMA vs two f32 streams and removes all mix work from the kernel.
    xk = (xx + delta * tmk).astype(jnp.bfloat16)
    xr = (xx + delta * tmr).astype(jnp.bfloat16)

    M = B * T
    xk2 = xk.reshape(M, C)
    xr2 = xr.reshape(M, C)

    pad = (-M) % tile_m
    if pad:
        xk2 = jnp.pad(xk2, ((0, pad), (0, 0)))
        xr2 = jnp.pad(xr2, ((0, pad), (0, 0)))
    Mp = M + pad

    # bf16 weights: half the HBM traffic / VMEM; dots accumulate in f32.
    wk = w_key.astype(jnp.bfloat16)
    wv = w_value.astype(jnp.bfloat16)
    wr = w_receptance.astype(jnp.bfloat16)

    cap = _vmem_cap_bytes()

    # Resident-path footprint (bf16 weights conservatively counted double-
    # buffered, bf16 xk/xr + f32 out tiles double-buffered, f32 temporaries).
    resident_bytes = (
        2 * 2 * (C * H + H * C + C * C)     # wk, wv, wr (bf16)
        + 2 * 2 * tile_m * C * 2            # xk, xr row tiles (bf16)
        + 2 * tile_m * C * 4                # output tile (f32)
        + tile_m * H * 4                    # k intermediate (f32)
        + 2 * tile_m * C * 4                # kv / r temporaries (f32)
    )

    if resident_bytes <= cap:
        grid = (Mp // tile_m,)
        vmem_limit = int(min(max(2 * resident_bytes, 16 << 20), cap))
        out = pl.pallas_call(
            _cm_resident_kernel,
            out_shape=jax.ShapeDtypeStruct((Mp, C), out_dtype),
            grid_spec=pltpu.PrefetchScalarGridSpec(
                num_scalar_prefetch=0,
                grid=grid,
                in_specs=[
                    pl.BlockSpec((tile_m, C), lambda i: (i, 0)),   # xk rows
                    pl.BlockSpec((tile_m, C), lambda i: (i, 0)),   # xr rows
                    pl.BlockSpec((C, H), lambda i: (0, 0)),        # key weight
                    pl.BlockSpec((H, C), lambda i: (0, 0)),        # value weight
                    pl.BlockSpec((C, C), lambda i: (0, 0)),        # receptance
                ],
                out_specs=pl.BlockSpec((tile_m, C), lambda i: (i, 0)),
            ),
            compiler_params=pltpu.CompilerParams(
                dimension_semantics=("parallel",),
                vmem_limit_bytes=vmem_limit),
        )(xk2, xr2, wk, wv, wr)
    else:
        # Fallback: tile the hidden axis, accumulate kv in f32 VMEM scratch.
        tile_h = _pick_divisor(H, tile_h)
        grid = (Mp // tile_m, H // tile_h)
        tiled_bytes = (
            2 * 2 * (C * tile_h + tile_h * C)   # wk/wv tiles (bf16, dbl-buf)
            + 2 * 2 * C * C                     # wr resident (bf16, dbl-buf)
            + 2 * 2 * tile_m * C * 2            # xk, xr row tiles (bf16)
            + 2 * tile_m * C * 4                # output tile (f32)
            + tile_m * C * 4                    # f32 kv accumulator scratch
            + tile_m * tile_h * 4               # k intermediate (f32)
        )
        vmem_limit = int(min(max(2 * tiled_bytes, 16 << 20), cap))
        out = pl.pallas_call(
            _cm_tiled_kernel,
            out_shape=jax.ShapeDtypeStruct((Mp, C), out_dtype),
            grid_spec=pltpu.PrefetchScalarGridSpec(
                num_scalar_prefetch=0,
                grid=grid,
                in_specs=[
                    pl.BlockSpec((tile_m, C), lambda i, h: (i, 0)),   # xk rows
                    pl.BlockSpec((tile_m, C), lambda i, h: (i, 0)),   # xr rows
                    pl.BlockSpec((C, tile_h), lambda i, h: (0, h)),   # key weight
                    pl.BlockSpec((tile_h, C), lambda i, h: (h, 0)),   # value weight
                    pl.BlockSpec((C, C), lambda i, h: (0, 0)),        # receptance
                ],
                out_specs=pl.BlockSpec((tile_m, C), lambda i, h: (i, 0)),
                scratch_shapes=[pltpu.VMEM((tile_m, C), jnp.float32)],
            ),
            compiler_params=pltpu.CompilerParams(
                dimension_semantics=("parallel", "arbitrary"),
                vmem_limit_bytes=vmem_limit),
        )(xk2, xr2, wk, wv, wr)

    return out[:M].reshape(B, T, C)


def rwkv_channel_mix_ref(x, time_mix_k, time_mix_r, w_key, w_receptance, w_value):
    """Pure-JAX f32 reference mirroring the PyTorch forward."""
    tmk = time_mix_k.reshape(1, 1, -1)
    tmr = time_mix_r.reshape(1, 1, -1)
    xx = jnp.pad(x, ((0, 0), (1, 0), (0, 0)))[:, :-1, :]
    xk = x * tmk + xx * (1.0 - tmk)
    xr = x * tmr + xx * (1.0 - tmr)
    k = jnp.square(jnp.maximum(xk @ w_key, 0.0))
    kv = k @ w_value
    return jax.nn.sigmoid(xr @ w_receptance) * kv


if __name__ == "__main__":
    # Small RWKV config: n_embd = 128, hidden = 4 * n_embd = 512, seq = 256
    # -> M = B*T = 512 rows, tile_m = 256 -> resident-weight path, grid = (2,).
    B, T, C = 2, 256, 128
    H = 4 * C

    key = jax.random.PRNGKey(0)
    k0, k1, k2, k3, k4, k5 = jax.random.split(key, 6)

    x = jax.random.normal(k0, (B, T, C), dtype=jnp.float32)
    # Module inits time_mix_* to ones; use non-trivial values to exercise the
    # time-shift path.
    time_mix_k = jax.random.uniform(k1, (1, 1, C), dtype=jnp.float32)
    time_mix_r = jax.random.uniform(k2, (1, 1, C), dtype=jnp.float32)
    # Linear weights stored as (in, out), i.e. PyTorch weight transposed.
    w_key = jax.random.normal(k3, (C, H), dtype=jnp.float32) * 0.02
    w_receptance = jax.random.normal(k4, (C, C), dtype=jnp.float32) * 0.02
    w_value = jax.random.normal(k5, (H, C), dtype=jnp.float32) * 0.02

    out = rwkv_channel_mix(x, time_mix_k, time_mix_r,
                           w_key, w_receptance, w_value)
    out = jax.block_until_ready(out)

    ref = rwkv_channel_mix_ref(x, time_mix_k, time_mix_r,
                               w_key, w_receptance, w_value)
    assert out.shape == (B, T, C)
    # bf16 MXU inputs (f32 accumulation) -> slightly looser tolerance vs f32 ref.
    assert jnp.allclose(out, ref, atol=5e-3, rtol=5e-2), "mismatch vs reference"

    print("KERNEL_OK")
</pallas_src>

<mosaic_0001>
module attributes {stable_mosaic.version = 11 : i64} {
  func.func @_cm_resident_kernel(%arg0: i32, %arg1: memref<256x128xbf16, #tpu.memory_space<vmem>>, %arg2: memref<256x128xbf16, #tpu.memory_space<vmem>>, %arg3: memref<128x512xbf16, #tpu.memory_space<vmem>>, %arg4: memref<512x128xbf16, #tpu.memory_space<vmem>>, %arg5: memref<128x128xbf16, #tpu.memory_space<vmem>>, %arg6: memref<256x128xf32, #tpu.memory_space<vmem>>) attributes {dimension_semantics = [#tpu.dimension_semantics<parallel>], iteration_bounds = array<i64: 2>, scalar_prefetch = 0 : i64, scratch_operands = 0 : i64, tpu.core_type = #tpu.core_type<tc>, window_params = [{transform_indices = @transform_0, window_bounds = array<i64: 256, 128>}, {transform_indices = @transform_1, window_bounds = array<i64: 256, 128>}, {pipeline_mode = #tpu.pipeline_mode<synchronous>, transform_indices = @transform_2, window_bounds = array<i64: 128, 512>}, {pipeline_mode = #tpu.pipeline_mode<synchronous>, transform_indices = @transform_3, window_bounds = array<i64: 512, 128>}, {pipeline_mode = #tpu.pipeline_mode<synchronous>, transform_indices = @transform_4, window_bounds = array<i64: 128, 128>}, {transform_indices = @transform_5, window_bounds = array<i64: 256, 128>}]} {
    %c0 = arith.constant 0 : index
    %c0_0 = arith.constant 0 : index
    %0 = vector.load %arg1[%c0, %c0_0] : memref<256x128xbf16, #tpu.memory_space<vmem>>, vector<256x128xbf16>
    %c0_1 = arith.constant 0 : index
    %c0_2 = arith.constant 0 : index
    %1 = vector.load %arg3[%c0_1, %c0_2] : memref<128x512xbf16, #tpu.memory_space<vmem>>, vector<128x512xbf16>
    %cst = arith.constant dense<0.000000e+00> : vector<256x512xf32>
    %2 = tpu.matmul %0, %1, %cst {dimension_numbers = #tpu.dot_dimension_numbers<[1], [0], [0], [1], [0, 0, 1, 1], [], []>} : vector<256x128xbf16>, vector<128x512xbf16>, vector<256x512xf32> -> vector<256x512xf32>
    %cst_3 = arith.constant 0.000000e+00 : f32
    %3 = vector.broadcast %cst_3 : f32 to vector<256x512xf32>
    %4 = arith.maximumf %2, %3 : vector<256x512xf32>
    %5 = arith.mulf %4, %4 : vector<256x512xf32>
    %6 = arith.truncf %5 : vector<256x512xf32> to vector<256x512xbf16>
    %c0_4 = arith.constant 0 : index
    %c0_5 = arith.constant 0 : index
    %7 = vector.load %arg4[%c0_4, %c0_5] : memref<512x128xbf16, #tpu.memory_space<vmem>>, vector<512x128xbf16>
    %cst_6 = arith.constant dense<0.000000e+00> : vector<256x128xf32>
    %8 = tpu.matmul %6, %7, %cst_6 {dimension_numbers = #tpu.dot_dimension_numbers<[1], [0], [0], [1], [0, 0, 1, 1], [], []>} : vector<256x512xbf16>, vector<512x128xbf16>, vector<256x128xf32> -> vector<256x128xf32>
    %c0_7 = arith.constant 0 : index
    %c0_8 = arith.constant 0 : index
    %9 = vector.load %arg2[%c0_7, %c0_8] : memref<256x128xbf16, #tpu.memory_space<vmem>>, vector<256x128xbf16>
    %c0_9 = arith.constant 0 : index
    %c0_10 = arith.constant 0 : index
    %10 = vector.load %arg5[%c0_9, %c0_10] : memref<128x128xbf16, #tpu.memory_space<vmem>>, vector<128x128xbf16>
    %cst_11 = arith.constant dense<0.000000e+00> : vector<256x128xf32>
    %11 = tpu.matmul %9, %10, %cst_11 {dimension_numbers = #tpu.dot_dimension_numbers<[1], [0], [0], [1], [0, 0, 1, 1], [], []>} : vector<256x128xbf16>, vector<128x128xbf16>, vector<256x128xf32> -> vector<256x128xf32>
    %12 = arith.negf %11 : vector<256x128xf32>
    %13 = math.exp %12 : vector<256x128xf32>
    %cst_12 = arith.constant 1.000000e+00 : f32
    %14 = vector.broadcast %cst_12 : f32 to vector<256x128xf32>
    %15 = arith.addf %14, %13 : vector<256x128xf32>
    %16 = arith.divf %14, %15 : vector<256x128xf32>
    %17 = arith.mulf %16, %8 : vector<256x128xf32>
    %c0_13 = arith.constant 0 : index
    %c0_14 = arith.constant 0 : index
    %18 = vector.load %arg6[%c0_13, %c0_14] : memref<256x128xf32, #tpu.memory_space<vmem>>, vector<256x128xf32>
    tpu.vector_store %arg6[%c0_13, %c0_14], %17 {strides = array<i32>} : memref<256x128xf32, #tpu.memory_space<vmem>>, vector<256x128xf32>,
    return
  }
  func.func @transform_0(%arg0: i32) -> (i32, i32) {
    %c0_i32 = arith.constant 0 : i32
    %c0_i32_0 = arith.constant 0 : i32
    return %arg0, %c0_i32 : i32, i32
  }
  func.func @transform_1(%arg0: i32) -> (i32, i32) {
    %c0_i32 = arith.constant 0 : i32
    %c0_i32_0 = arith.constant 0 : i32
    return %arg0, %c0_i32 : i32, i32
  }
  func.func @transform_2(%arg0: i32) -> (i32, i32) {
    %c0_i32 = arith.constant 0 : i32
    %c0_i32_0 = arith.constant 0 : i32
    %c0_i32_1 = arith.constant 0 : i32
    return %c0_i32, %c0_i32_0 : i32, i32
  }
  func.func @transform_3(%arg0: i32) -> (i32, i32) {
    %c0_i32 = arith.constant 0 : i32
    %c0_i32_0 = arith.constant 0 : i32
    %c0_i32_1 = arith.constant 0 : i32
    return %c0_i32, %c0_i32_0 : i32, i32
  }
  func.func @transform_4(%arg0: i32) -> (i32, i32) {
    %c0_i32 = arith.constant 0 : i32
    %c0_i32_0 = arith.constant 0 : i32
    %c0_i32_1 = arith.constant 0 : i32
    return %c0_i32, %c0_i32_0 : i32, i32
  }
  func.func @transform_5(%arg0: i32) -> (i32, i32) {
    %c0_i32 = arith.constant 0 : i32
    %c0_i32_0 = arith.constant 0 : i32
    return %arg0, %c0_i32 : i32, i32
  }
}

</mosaic_0001>

<bundles_post_ra>
// kernel: tpu_custom_call.1
= control target key start
LH: loop header
LB: loop body
LE: loop exit
PB: predicated region body
PF: predicated region fallthrough
CT: control target
= control target key end

     0   :  { %s5237_s0 = inlined_call_operand.hbm [shape: bf16[512,128], index: 0, kind: input, shape index: {}]   ;;  %s5238_s1 = inlined_call_operand.hbm [shape: bf16[512,128], index: 1, kind: input, shape index: {}]   ;;  %s5239_s2 = inlined_call_operand.hbm [shape: bf16[128,512], index: 2, kind: input, shape index: {}]   ;;  %s5240_s3 = inlined_call_operand.hbm [shape: bf16[512,128], index: 3, kind: input, shape index: {}]   ;;  %s5241_s4 = inlined_call_operand.hbm [shape: bf16[128,128], index: 4, kind: input, shape index: {}]   ;;  %s5242_s5 = inlined_call_operand.hbm [shape: f32[512,128], index: 5, kind: output, shape index: {}]  }
   0x1   :  { %5247 = sst [smem:[#allocation33_spill]] %s5237_s0 }
   0x2   :  { %5248 = sst [smem:[#allocation34_spill]] %s5239_s2 }
   0x3   :  { %5249 = sst [smem:[#allocation35_spill]] %s5240_s3 }
   0x4   :  { %10 = vsyncpa [#allocation3], 0 }
   0x5   :  { %12 = vsyncpa [#allocation3 + $0x1], 0 }
   0x6   :  { %13 = vsyncpa [#allocation6], 0 }
   0x7   :  { %15 = vsyncpa [#allocation6 + $0x1], 0 }
   0x8   :  { %16 = vsyncpa [#allocation9], 0 }
   0x9   :  { %17 = vsyncpa [#allocation4], 0 }
   0xa   :  { %19 = vsyncpa [#allocation4 + $0x1], 0  ;;  %s4128_s18 = smov 0   ;;  %s4130_s19 = smov 0  }
   0xb   :  { %s4132_s20 = smov 0   ;;  %s4134_s21 = smov 0  }
   0xc LB: > { %s4149_s22 = sadd.s32 4294967295, %s4087_s21   ;;  %s3040_s23 = sadd.s32 4294967294, %s4087_s21   ;;  %s4087_s21 = sphi %s4134_s21, %s5314_s21   ;;  %s4083_s20 = sphi %s4132_s20, %s5313_s20   ;;  %s4079_s19 = sphi %s4130_s19, %s5312_s19   ;;  %s4075_s18 = sphi %s4128_s18, %s5311_s18  }
   0xd   : > { %p45_p0 = scmp.ne.s32.totalorder %s4079_s19, %s4075_s18  ;;  %p46_p1 = scmp.eq.s32.totalorder %s4149_s22, 0 }
   0xe   : > { %p158_p2 = scmp.eq.s32.totalorder %s4149_s22, 1  ;;  %p164_p3 = scmp.eq.s32.totalorder %s3040_s23, 1 }
   0xf   : > { %p4158_p4 = por %p46_p1, %p45_p0  ;;  %p3041_p5 = scmp.ge.s32.totalorder %s4087_s21, 1 }
  0x10   : > { %p4163_p6 = por %p164_p3, %p45_p0  ;;  %p171_p7 = scmp.lt.s32.totalorder %s4087_s21, 3 }
  0x11   : > { %s5252_s2 = sld [smem:[#allocation34_spill]]  ;;  %s4089_s30 = smov [#allocation7]  }
  0x12   : > { %p4171_p8 = pnand %p3041_p5, %p171_p7  ;;  %s184_s6 = sshll.u32 %s4089_s30, 4  ;;  %s185_s6 = int_to_ptr.vmem [resolvable:$true] %s184_s6 }
  0x13   : > { %s5255_s3 = sld [smem:[#allocation35_spill]]  ;;  %s4090_s11 = smov 256  }
  0x14   : > { %p3661_p9 = pneg %p4171_p8  ;;  %s4091_s12 = smov 16  }
  0x15   : > { %s4092_s13 = smov [#allocation8]   ;;  %s5243_s15 = smov 64  }
  0x16   : > { %p4179_p10 = pnand %p3661_p9, %p46_p1  ;;  %s198_s14 = sshll.u32 %s4092_s13, 4  ;;  %s199_s14 = int_to_ptr.vmem [resolvable:$true] %s198_s14 }
  0x17   : > { %s182_s28 = sshll.u32 %s5252_s2, 4  ;;  %s5245_s16 = smov 4   ;;  %s183_s28 = int_to_ptr.hbm [resolvable:$true] %s182_s28 }
  0x18   : > { %3664 = dma.hbm_to_vmem [thread:$0]  (!%p4179_p10), %s183_s28, 4096, %s185_s6, [#allocation6], %s4090_s11, %s4090_s11, %s4091_s12  }
  0x19   : > { %s196_s10 = sshll.u32 %s5255_s3, 4  ;;  %s210_s26 = sshll.u32 %s5241_s4, 4  ;;  %s197_s10 = int_to_ptr.hbm [resolvable:$true] %s196_s10  ;;  %s211_s26 = int_to_ptr.hbm [resolvable:$true] %s210_s26 }
  0x1a   : > { %3667 = dma.hbm_to_vmem [thread:$0]  (!%p4179_p10), %s197_s10, 4096, %s199_s14, [#allocation9], %s5243_s15, %s5243_s15, %s5245_s16  }
  0x1b   : > { %s4095_s27 = smov [#allocation10]   ;;  %s4203_s30 = sadd.s32 1, %s4087_s21  }
  0x1c   : > { %s212_s28 = sshll.u32 %s4095_s27, 4  ;;  %s29_s6 = ssub.s32 %s4087_s21, %s4203_s30  ;;  %s213_s28 = int_to_ptr.vmem [resolvable:$true] %s212_s28 }
  0x1d   : > { %3670 = dma.hbm_to_vmem [thread:$0]  (!%p4179_p10), %s211_s26, 1024, %s213_s28, [#allocation9], %s5243_s15, %s5243_s15, %s5245_s16  }
  0x1e   : > { %s32_s8 = sadd.s32 1, %s4083_s20  ;;  %p30_p12 = scmp.eq.s32.totalorder %s29_s6, 0 }
  0x1f   : > { %p39_p13 = scmp.ne.s32.totalorder %s4083_s20, %s4079_s19  ;;  %p40_p0 = scmp.eq.s32.totalorder %s4087_s21, 0 }
  0x20   : > { %p3685_p3 = scmp.lt.s32.totalorder %s4087_s21, 2  ;;  %s226_s10 = sand.u32 1, %s4083_s20  }
  0x21   : > { %s4213_s9 = scalar_select %p30_p12, %s4083_s20, %s32_s8  }
  0x22   : > { %p41_p5 = por %p40_p0, %p39_p13  ;;  %p4217_p7 = por %p158_p2, %p39_p13 }
  0x23   : > { %s3512_s11 = sshll.u32 %s4087_s21, 7  ;;  %s3046_s12 = sshll.u32 %s226_s10, 7 }
  0x24   : > { %s5257_s0 = sld [smem:[#allocation33_spill]]  ;;  %s230_s26 = scalar_lea.vmem [#allocation2], %s3046_s12 }
  0x25   : > { %s238_s27 = sshll.u32 %s230_s26, 4  ;;  %p4228_p9 = pnand %p3685_p3, %p41_p5  ;;  %s239_s27 = int_to_ptr.vmem [resolvable:$true] %s238_s27 }
  0x26   : > { %s257_s15 = scalar_lea.hbm %s5238_s1, %s3512_s11  ;;  %s252_s16 = scalar_lea.vmem [#allocation5], %s3046_s12 }
  0x27   : > { %s4235_s2 = sshll.u32 %s252_s16, 4  ;;  %s258_s13 = sshll.u32 %s257_s15, 4  ;;  %s259_s13 = int_to_ptr.hbm [resolvable:$true] %s258_s13  ;;  %s261_s2 = int_to_ptr.vmem [resolvable:$true] %s4235_s2 }
  0x28   : > { %s227_s14 = scalar_lea.sflag [#allocation3], %s226_s10  ;;  %p3953_p10 = pneg %p4228_p9 }
  0x2a   : > { %s235_s17 = scalar_lea.hbm %s5257_s0, %s3512_s11  ;;  %s3956_s8 = scalar_lea.hbm %s5257_s0, 256 }
  0x2b   : > { %s236_s23 = sshll.u32 %s235_s17, 4  ;;  %s237_s23 = int_to_ptr.hbm [resolvable:$true] %s236_s23 }
  0x2c   : > { %s3949_s17 = sshra.s32 %s237_s23, 4  ;;  %s3950_s17 = int_to_ptr.hbm [resolvable:$true] %s3949_s17 }
  0x2d   : > { %s3951_s26 = scalar_lea.hbm %s3950_s17, 128  ;;  %p3957_p0 = scmp.lt.s32.totalorder %s3950_s17, %s5257_s0 }
  0x2e   : > { %p3952_p2 = scmp.ne.s32.totalorder %s3950_s17, %s3951_s26  ;;  %p3958_p3 = scmp.lt.s32.totalorder %s3956_s8, %s3951_s26 }
  0x30   : > { %p3954_p12 = pnand %p3953_p10, %p3952_p2  ;;  %p3959_p5 = por %p3958_p3, %p3957_p0 }
  0x32   : > { %p3955_p13 = pneg %p3954_p12 }
  0x34   : > { %p3960_p11 = pnand %p3959_p5, %p3955_p13 }
  0x36   : > { %3963 = shalt.err (!%p3960_p11)
}
  0x37   : > { %s5259_s15 = smov 4   ;;  %s5260_s16 = smov 64  }
  0x38   : > { %3674 = dma.hbm_to_vmem [thread:$0]  (!%p4228_p9), %s237_s23, 2048, %s239_s27, %s227_s14, %s5260_s16, %s5260_s16, %s5259_s15  }
  0x39   : > { %s248_s3 = sand.u32 1, %s4087_s21   ;;  %s3979_s6 = sshra.s32 %s259_s13, 4  ;;  %s3980_s6 = int_to_ptr.hbm [resolvable:$true] %s3979_s6 }
  0x3a   : > { %s249_s10 = scalar_lea.sflag [#allocation6], %s248_s3  ;;  %s3981_s17 = scalar_lea.hbm %s3980_s6, 128 }
  0x3b   : > { %p3982_p2 = scmp.ne.s32.totalorder %s3980_s6, %s3981_s17  ;;  %s3986_s11 = scalar_lea.hbm %s5238_s1, 256 }
  0x3c   : > { %p3987_p13 = scmp.lt.s32.totalorder %s3980_s6, %s5238_s1  ;;  %p3988_p0 = scmp.lt.s32.totalorder %s3986_s11, %s3981_s17 }
  0x3d   : > { %p3984_p11 = pnand %p3982_p2, %p3953_p10 }
  0x3e   : > { %p3989_p3 = por %p3988_p0, %p3987_p13 }
  0x3f   : > { %p3985_p12 = pneg %p3984_p11 }
  0x41   : > { %p3990_p5 = pnand %p3989_p3, %p3985_p12 }
  0x43   : > { %3993 = shalt.err (!%p3990_p5)
}
  0x44   : > { %3677 = dma.hbm_to_vmem [thread:$0]  (!%p4228_p9), %s259_s13, 2048, %s261_s2, %s249_s10, %s5260_s16, %s5260_s16, %s5259_s15  }
  0x45   : > { %272 = sbr.rel (%p4171_p8) target bundleno = 923 (0x39b), region = 40 }
  0x4a   : > { %s4272_s23 = sand.u32 1, %s4079_s19  }
  0x4b   : > { %s3053_s0 = sshll.u32 %s4272_s23, 7  ;;  %s275_s27 = scalar_lea.sflag [#allocation3], %s4272_s23 }
  0x4c   : > { %s4276_s14 = scalar_lea.vmem [#allocation2], %s3053_s0 }
  0x4d   : > { %4054 = dma.done.wait (%p4158_p4), %s275_s27, 2048  }
  0x4e   : > { %4056 = vsyncadd (%p4158_p4), %s275_s27, 4294965248  ;;  %s284_s2 = sand.u32 1, %s4149_s22   ;;  %s4283_s28 = scalar_lea.vmem [#allocation5], %s3053_s0 }
  0x4f   : > { %s285_s29 = scalar_lea.sflag [#allocation6], %s284_s2 }
  0x50   : > { %4058 = dma.done.wait (%p4158_p4), %s285_s29, 2048  }
  0x51   : > { %4060 = vsyncadd (%p4158_p4), %s285_s29, 4294965248 }
  0x52   : > { %4062 = dma.done.wait (%p46_p1), [#allocation6], 4096  }
  0x53   : > { %4064 = vsyncadd (%p46_p1), [#allocation6], 4294963200 }
  0x54   : > { %4066 = dma.done.wait (%p46_p1), [#allocation9], 5120  }
  0x55   : > { %4068 = vsyncadd (%p46_p1), [#allocation9], 4294962176  ;;  %v3237_v0 = vld [vmem:[#allocation7 + $0xe0] sm:$0xf]  ;;  %v3560_v1 = vld [vmem:[#allocation7 + $0xec] sm:$0xf0] }
  0x56   : > { %v3221_v2 = vld [vmem:[#allocation7 + $0xc0] sm:$0xf]  ;;  %v3238_v3 = vor.u32 %v3560_v1, %v3237_v0  ;;  %v3556_v4 = vld [vmem:[#allocation7 + $0xcc] sm:$0xf0]  ;;  %v3558_v28 = vld [vmem:[#allocation7 + $0xe4] sm:$0xf] }
  0x57   : > { %v3222_v5 = vor.u32 %v3556_v4, %v3221_v2  ;;  %v3205_v6 = vld [vmem:[#allocation7 + $0xa0] sm:$0xf]  ;;  %v3552_v7 = vld [vmem:[#allocation7 + $0xac] sm:$0xf0]  ;;  %v3239_v29 = vld [vmem:[#allocation7 + $0xf0] sm:$0xf0] }
  0x58   : > { %659 = vmatpush.bf16.msra.mxu0 %v3238_v3  ;;  %3619 = vmatpush.bf16.msra.mxu1 %v3238_v3  ;;  %v3206_v8 = vor.u32 %v3552_v7, %v3205_v6  ;;  %v3189_v9 = vld [vmem:[#allocation7 + $0x80] sm:$0xf]  ;;  %v3548_v10 = vld [vmem:[#allocation7 + $0x8c] sm:$0xf0]  ;;  %v3245_v30 = vld [vmem:[#allocation7 + $0xe8] sm:$0xf]  ;;  %v3242_v31 = vor.u32 %v3558_v28, %v3239_v29 }
  0x59   : > { %3620 = vmatpush.bf16.msra.mxu2 %v3238_v3  ;;  %3621 = vmatpush.bf16.msra.mxu3 %v3238_v3  ;;  %v3190_v11 = vor.u32 %v3548_v10, %v3189_v9  ;;  %v3173_v12 = vld [vmem:[#allocation7 + $0x60] sm:$0xf]  ;;  %v3544_v13 = vld [vmem:[#allocation7 + $0x6c] sm:$0xf0]  ;;  %v3561_v32 = vld [vmem:[#allocation7 + $0xf4] sm:$0xf0] }
  0x5a   : > { %v3174_v14 = vor.u32 %v3544_v13, %v3173_v12  ;;  %v3157_v15 = vld [vmem:[#allocation7 + $0x40] sm:$0xf]  ;;  %v3540_v16 = vld [vmem:[#allocation7 + $0x4c] sm:$0xf0]  ;;  %v3559_v33 = vld [vmem:[#allocation7 + $0xec] sm:$0xf]  ;;  %v3246_v35 = vor.u32 %v3561_v32, %v3245_v30 }
  0x5b   : > { %v3158_v17 = vor.u32 %v3540_v16, %v3157_v15  ;;  %v3141_v18 = vld [vmem:[#allocation7 + $0x20] sm:$0xf]  ;;  %v3536_v19 = vld [vmem:[#allocation7 + $0x2c] sm:$0xf0]  ;;  %v3247_v34 = vld [vmem:[#allocation7 + $0xf8] sm:$0xf0] }
  0x5c   : > { %660 = vmatpush.bf16.msra.mxu0 %v3222_v5  ;;  %3622 = vmatpush.bf16.msra.mxu1 %v3222_v5  ;;  %v3142_v20 = vor.u32 %v3536_v19, %v3141_v18  ;;  %v3125_v21 = vld [vmem:[#allocation7] sm:$0xf]  ;;  %v3532_v22 = vld [vmem:[#allocation7 + $0xc] sm:$0xf0]  ;;  %v3250_v36 = vor.u32 %v3559_v33, %v3247_v34  ;;  %v3554_v37 = vld [vmem:[#allocation7 + $0xc4] sm:$0xf] }
  0x5d   : > { %3623 = vmatpush.bf16.msra.mxu2 %v3222_v5  ;;  %3624 = vmatpush.bf16.msra.mxu3 %v3222_v5  ;;  %v3126_v23 = vor.u32 %v3532_v22, %v3125_v21  ;;  %v4298_v24 = vld [vmem:[%s4276_s14] sm:$0xff]  ;;  %v3223_v38 = vld [vmem:[#allocation7 + $0xd0] sm:$0xf0]  ;;  %v3229_v39 = vld [vmem:[#allocation7 + $0xc8] sm:$0xf]  ;;  %s3058_s24 = sshll.u32 %s4272_s23, 8 }
  0x5e   : > { %v4301_v25 = vld [vmem:[%s4276_s14 + $0x20] sm:$0xff]  ;;  %v3226_v40 = vor.u32 %v3554_v37, %v3223_v38  ;;  %v3557_v41 = vld [vmem:[#allocation7 + $0xd4] sm:$0xf0]  ;;  %v3555_v42 = vld [vmem:[#allocation7 + $0xcc] sm:$0xf]  ;;  %s4966_s13 = scalar_lea.vmem [#allocation11], %s3058_s24 }
  0x5f   : > { %v4304_v26 = vld [vmem:[%s4276_s14 + $0x40] sm:$0xff]  ;;  %v3231_v43 = vld [vmem:[#allocation7 + $0xd8] sm:$0xf0]  ;;  %v3230_v44 = vor.u32 %v3557_v41, %v3229_v39  ;;  %v3207_v47 = vld [vmem:[#allocation7 + $0xb0] sm:$0xf0]  ;;  %s3618_s15 = sshll.u32 %s4149_s22, 8 }
  0x60   : > { %661 = vmatpush.bf16.msra.mxu0 %v3206_v8  ;;  %3625 = vmatpush.bf16.msra.mxu1 %v3206_v8  ;;  %v4307_v27 = vld [vmem:[%s4276_s14 + $0x60] sm:$0xff]  ;;  %v3234_v45 = vor.u32 %v3555_v42, %v3231_v43  ;;  %v3213_v48 = vld [vmem:[#allocation7 + $0xa8] sm:$0xf]  ;;  %v3553_v49 = vld [vmem:[#allocation7 + $0xb4] sm:$0xf0]  ;;  %s2912_s10 = scalar_lea.hbm %s5242_s5, %s3618_s15  ;;  %s2913_s22 = sshll.u32 %s4966_s13, 4  ;;  %s2914_s22 = int_to_ptr.vmem [resolvable:$true] %s2913_s22 }
  0x61   : > { %3626 = vmatpush.bf16.msra.mxu2 %v3206_v8  ;;  %3627 = vmatpush.bf16.msra.mxu3 %v3206_v8  ;;  %v3550_v46 = vld [vmem:[#allocation7 + $0xa4] sm:$0xf]  ;;  %v3551_v50 = vld [vmem:[#allocation7 + $0xac] sm:$0xf]  ;;  %v3215_v51 = vld [vmem:[#allocation7 + $0xb8] sm:$0xf0]  ;;  %v3214_v53 = vor.u32 %v3553_v49, %v3213_v48 }
  0x62   : > { %v3210_v52 = vor.u32 %v3550_v46, %v3207_v47  ;;  %v3218_v54 = vor.u32 %v3551_v50, %v3215_v51  ;;  %v3546_v55 = vld [vmem:[#allocation7 + $0x84] sm:$0xf]  ;;  %v3191_v56 = vld [vmem:[#allocation7 + $0x90] sm:$0xf0]  ;;  %v3197_v57 = vld [vmem:[#allocation7 + $0x88] sm:$0xf] }
  0x63   : > { %v3194_v58 = vor.u32 %v3546_v55, %v3191_v56  ;;  %v3549_v59 = vld [vmem:[#allocation7 + $0x94] sm:$0xf0]  ;;  %v3547_v60 = vld [vmem:[#allocation7 + $0x8c] sm:$0xf]  ;;  %v3199_v61 = vld [vmem:[#allocation7 + $0x98] sm:$0xf0] }
  0x64   : > { %662 = vmatpush.bf16.msra.mxu0 %v3190_v11  ;;  %3628 = vmatpush.bf16.msra.mxu1 %v3190_v11  ;;  %v4314_v62 = vld [vmem:[%s4276_s14 + $0x8] sm:$0xff]  ;;  %v3198_v2 = vor.u32 %v3549_v59, %v3197_v57  ;;  %v3202_v3 = vor.u32 %v3547_v60, %v3199_v61  ;;  %v3542_v4 = vld [vmem:[#allocation7 + $0x64] sm:$0xf]  ;;  %v3175_v5 = vld [vmem:[#allocation7 + $0x70] sm:$0xf0]  ;;  %s2915_s6 = sshll.u32 %s2912_s10, 4  ;;  %s2916_s6 = int_to_ptr.hbm [resolvable:$true] %s2915_s6 }
  0x65   : > { %3629 = vmatpush.bf16.msra.mxu2 %v3190_v11  ;;  %3630 = vmatpush.bf16.msra.mxu3 %v3190_v11  ;;  %v4317_v63 = vld [vmem:[%s4276_s14 + $0x28] sm:$0xff]  ;;  %v3178_v7 = vor.u32 %v3542_v4, %v3175_v5  ;;  %v3545_v8 = vld [vmem:[#allocation7 + $0x74] sm:$0xf0]  ;;  %v3183_v10 = vld [vmem:[#allocation7 + $0x78] sm:$0xf0]  ;;  %s2901_s17 = scalar_lea.sflag [#allocation4], %s4272_s23 }
  0x66   : > { %v4320_v0 = vld [vmem:[%s4276_s14 + $0x48] sm:$0xff]  ;;  %v3538_v13 = vld [vmem:[#allocation7 + $0x44] sm:$0xf]  ;;  %v3167_v19 = vld [vmem:[#allocation7 + $0x58] sm:$0xf0]  ;;  %s4023_s26 = sshra.s32 %s2916_s6, 4  ;;  %s4024_s26 = int_to_ptr.hbm [resolvable:$true] %s4023_s26 }
  0x67   : > { %v4323_v1 = vld [vmem:[%s4276_s14 + $0x68] sm:$0xff]  ;;  %v3143_v21 = vld [vmem:[#allocation7 + $0x30] sm:$0xf0]  ;;  %v3537_v30 = vld [vmem:[#allocation7 + $0x34] sm:$0xf0]  ;;  %s4025_s8 = scalar_lea.hbm %s4024_s26, 256  ;;  %p4030_p9 = scmp.lt.s32.totalorder %s4024_s26, %s5242_s5 }
  0x68   : > { %663 = vmatpush.bf16.msra.mxu0 %v3174_v14  ;;  %3631 = vmatpush.bf16.msra.mxu1 %v3174_v14  ;;  %v3181_v6 = vld [vmem:[#allocation7 + $0x68] sm:$0xf]  ;;  %v3543_v9 = vld [vmem:[#allocation7 + $0x6c] sm:$0xf]  ;;  %v3151_v32 = vld [vmem:[#allocation7 + $0x38] sm:$0xf0]  ;;  %p4026_p1 = scmp.ne.s32.totalorder %s4024_s26, %s4025_s8 }
  0x69   : > { %3632 = vmatpush.bf16.msra.mxu2 %v3174_v14  ;;  %3633 = vmatpush.bf16.msra.mxu3 %v3174_v14  ;;  %v3182_v11 = vor.u32 %v3545_v8, %v3181_v6  ;;  %v3186_v12 = vor.u32 %v3543_v9, %v3183_v10  ;;  %v3159_v14 = vld [vmem:[#allocation7 + $0x50] sm:$0xf0]  ;;  %v3165_v15 = vld [vmem:[#allocation7 + $0x48] sm:$0xf]  ;;  %v3539_v18 = vld [vmem:[#allocation7 + $0x4c] sm:$0xf] }
  0x6a   : > { %v3162_v16 = vor.u32 %v3538_v13, %v3159_v14  ;;  %v3149_v28 = vld [vmem:[#allocation7 + $0x28] sm:$0xf]  ;;  %v3530_v33 = vld [vmem:[#allocation7 + $0x4] sm:$0xf]  ;;  %v3127_v34 = vld [vmem:[#allocation7 + $0x10] sm:$0xf0]  ;;  %p4027_p4 = pnand %p4026_p1, %p4217_p7 }
  0x6b   : > { %v3133_v37 = vld [vmem:[#allocation7 + $0x8] sm:$0xf]  ;;  %v3130_v38 = vor.u32 %v3530_v33, %v3127_v34  ;;  %v3533_v39 = vld [vmem:[#allocation7 + $0x14] sm:$0xf0]  ;;  %v3135_v41 = vld [vmem:[#allocation7 + $0x18] sm:$0xf0] }
  0x6c   : > { %664 = vmatpush.bf16.msra.mxu0 %v3158_v17  ;;  %3634 = vmatpush.bf16.msra.mxu1 %v3158_v17  ;;  %v3516_v42 = vld [vmem:[%s4276_s14 + $0x10] sm:$0xff]  ;;  %v3134_v46 = vor.u32 %v3533_v39, %v3133_v37  ;;  %v3569_v48 = vld [vmem:[#allocation8 + $0x38] sm:$0xff]  ;;  %v3566_v55 = vld [vmem:[#allocation8 + $0x20] sm:$0xff]  ;;  %p4028_p8 = pneg %p4027_p4  ;;  %s4029_s0 = scalar_lea.hbm %s5242_s5, 512 }
  0x6d   : > { %3635 = vmatpush.bf16.msra.mxu2 %v3158_v17  ;;  %3636 = vmatpush.bf16.msra.mxu3 %v3158_v17  ;;  %v3541_v17 = vld [vmem:[#allocation7 + $0x54] sm:$0xf0]  ;;  %v4331_v43 = vld [vmem:[%s4276_s14 + $0x30] sm:$0xff]  ;;  %v3562_v59 = vld [vmem:[#allocation8] sm:$0xff]  ;;  %p4031_p10 = scmp.lt.s32.totalorder %s4029_s0, %s4025_s8 }
  0x6e   : > { %v3166_v22 = vor.u32 %v3541_v17, %v3165_v15  ;;  %v3517_v49 = vld [vmem:[%s4276_s14 + $0x18] sm:$0xff]  ;;  %v3564_v57 = vld [vmem:[#allocation8 + $0x10] sm:$0xff] }
  0x6f   : > { %v4344_v50 = vld [vmem:[%s4276_s14 + $0x38] sm:$0xff]  ;;  %v3584_v33 = vld [vmem:[#allocation8 + $0xb0] sm:$0xff]  ;;  %p4032_p2 = por %p4031_p10, %p4030_p9 }
  0x70   : > { %665 = vmatpush.bf16.msra.mxu0 %v3142_v20  ;;  %3637 = vmatpush.bf16.msra.mxu1 %v3142_v20  ;;  %v4347_v51 = vld [vmem:[%s4276_s14 + $0x58] sm:$0xff]  ;;  %v3592_v34 = vld [vmem:[#allocation8 + $0xf0] sm:$0xff] }
  0x71   : > { %3638 = vmatpush.bf16.msra.mxu2 %v3142_v20  ;;  %3639 = vmatpush.bf16.msra.mxu3 %v3142_v20  ;;  %v3534_v20 = vld [vmem:[#allocation7 + $0x24] sm:$0xf]  ;;  %v3565_v56 = vld [vmem:[#allocation8 + $0x18] sm:$0xff]  ;;  %p4033_p11 = pnand %p4032_p2, %p4028_p8 }
  0x72   : > { %v3146_v29 = vor.u32 %v3534_v20, %v3143_v21 }
  0x74   : > { %666 = vmatpush.bf16.msra.mxu0 %v3126_v23  ;;  %3640 = vmatpush.bf16.msra.mxu1 %v3126_v23 }
  0x75   : > { %3641 = vmatpush.bf16.msra.mxu2 %v3126_v23  ;;  %3642 = vmatpush.bf16.msra.mxu3 %v3126_v23  ;;  %v3170_v23 = vor.u32 %v3539_v18, %v3167_v19 }
  0x77   : > { %667 = vmatmul.bf16.vlgmr.msra.gmra.mxu0 %v4298_v24  ;;  %687 = vmatmul.bf16.vlgmr.msra.gmra.mxu1 %v4301_v25 }
  0x78   : > { %707 = vmatmul.bf16.vlgmr.msra.gmra.mxu2 %v4304_v26  ;;  %727 = vmatmul.bf16.vlgmr.msra.gmra.mxu3 %v4307_v27 }
  0x79   : > { %748 = vmatpush.bf16.msrb.mxu1 %v3242_v31  ;;  %837 = vmatpush.bf16.msrb.mxu2 %v3246_v35  ;;  %v3535_v31 = vld [vmem:[#allocation7 + $0x2c] sm:$0xf]  ;;  %v3150_v35 = vor.u32 %v3537_v30, %v3149_v28 }
  0x7a   : > { %926 = vmatpush.bf16.msrb.mxu3 %v3250_v36  ;;  %v3154_v36 = vor.u32 %v3535_v31, %v3151_v32  ;;  %1591 = vmatpush.bf16.msrb.mxu0 %v3569_v48 }
  0x7d   : > { %749 = vmatpush.bf16.msrb.mxu1 %v3226_v40  ;;  %838 = vmatpush.bf16.msrb.mxu2 %v3230_v44  ;;  %v3531_v40 = vld [vmem:[#allocation7 + $0xc] sm:$0xf]  ;;  %v4334_v44 = vld [vmem:[%s4276_s14 + $0x50] sm:$0xff] }
  0x7e   : > { %927 = vmatpush.bf16.msrb.mxu3 %v3234_v45  ;;  %v4337_v45 = vld [vmem:[%s4276_s14 + $0x70] sm:$0xff]  ;;  %v3138_v47 = vor.u32 %v3531_v40, %v3135_v41 }
  0x81   : > { %750 = vmatpush.bf16.msrb.mxu1 %v3210_v52  ;;  %839 = vmatpush.bf16.msrb.mxu2 %v3214_v53  ;;  %v4350_v52 = vld [vmem:[%s4276_s14 + $0x78] sm:$0xff]  ;;  %v3568_v53 = vld [vmem:[#allocation8 + $0x30] sm:$0xff] }
  0x82   : > { %928 = vmatpush.bf16.msrb.mxu3 %v3218_v54  ;;  %1592 = vmatpush.bf16.msrb.mxu0 %v3568_v53  ;;  %v3567_v54 = vld [vmem:[#allocation8 + $0x28] sm:$0xff] }
  0x85   : > { %751 = vmatpush.bf16.msrb.mxu1 %v3194_v58  ;;  %840 = vmatpush.bf16.msrb.mxu2 %v3198_v2  ;;  %v3563_v58 = vld [vmem:[#allocation8 + $0x8] sm:$0xff]  ;;  %v3593_v2 = vld [vmem:[#allocation8 + $0xf8] sm:$0xff] }
  0x86   : > { %929 = vmatpush.bf16.msrb.mxu3 %v3202_v3  ;;  %1593 = vmatpush.bf16.msrb.mxu0 %v3567_v54  ;;  %v3577_v3 = vld [vmem:[#allocation8 + $0x78] sm:$0xff]  ;;  %v3615_v54 = vld [vmem:[#allocation10 + $0x28] sm:$0xff] }
  0x87   : > { %672 = vmatmul.bf16.gmra.mxu0 %v4314_v62  ;;  %692 = vmatmul.bf16.gmra.mxu1 %v4317_v63 }
  0x88   : > { %712 = vmatmul.bf16.gmra.mxu2 %v4320_v0  ;;  %732 = vmatmul.bf16.gmra.mxu3 %v4323_v1 }
  0x89   : > { %752 = vmatpush.bf16.msrb.mxu1 %v3178_v7  ;;  %841 = vmatpush.bf16.msrb.mxu2 %v3182_v11 }
  0x8a   : > { %930 = vmatpush.bf16.msrb.mxu3 %v3186_v12  ;;  %1594 = vmatpush.bf16.msrb.mxu0 %v3566_v55 }
  0x8d   : > { %753 = vmatpush.bf16.msrb.mxu1 %v3162_v16  ;;  %842 = vmatpush.bf16.msrb.mxu2 %v3166_v22  ;;  %v3616_v16 = vld [vmem:[#allocation10 + $0x30] sm:$0xff] }
  0x8e   : > { %931 = vmatpush.bf16.msrb.mxu3 %v3170_v23  ;;  %1595 = vmatpush.bf16.msrb.mxu0 %v3565_v56 }
  0x91   : > { %754 = vmatpush.bf16.msrb.mxu1 %v3146_v29  ;;  %843 = vmatpush.bf16.msrb.mxu2 %v3150_v35  ;;  %v3576_v35 = vld [vmem:[#allocation8 + $0x70] sm:$0xff] }
  0x92   : > { %932 = vmatpush.bf16.msrb.mxu3 %v3154_v36  ;;  %1596 = vmatpush.bf16.msrb.mxu0 %v3564_v57 }
  0x95   : > { %755 = vmatpush.bf16.msrb.mxu1 %v3130_v38  ;;  %844 = vmatpush.bf16.msrb.mxu2 %v3134_v46 }
  0x96   : > { %933 = vmatpush.bf16.msrb.mxu3 %v3138_v47  ;;  %1597 = vmatpush.bf16.msrb.mxu0 %v3563_v58 }
  0x97   : > { %677 = vmatmul.bf16.gmra.mxu0 %v3516_v42  ;;  %697 = vmatmul.bf16.gmra.mxu1 %v4331_v43 }
  0x98   : > { %717 = vmatmul.bf16.gmra.mxu2 %v4334_v44  ;;  %737 = vmatmul.bf16.gmra.mxu3 %v4337_v45 }
  0x99   : > { %1680 = vmatpush.bf16.msra.mxu1 %v3577_v3 }
  0x9a   : > { %1598 = vmatpush.bf16.msrb.mxu0 %v3562_v59  ;;  %1858 = vmatpush.bf16.msra.mxu3 %v3593_v2 }
  0x9d   : > { %1681 = vmatpush.bf16.msra.mxu1 %v3576_v35 }
  0x9e   : > { %1859 = vmatpush.bf16.msra.mxu3 %v3592_v34 }
  0xa7   : > { %682 = vmatmul.bf16.gmra.mxu0 %v3517_v49  ;;  %702 = vmatmul.bf16.gmra.mxu1 %v4344_v50 }
  0xa8   : > { %722 = vmatmul.bf16.gmra.mxu2 %v4347_v51  ;;  %742 = vmatmul.bf16.gmra.mxu3 %v4350_v52 }
  0xb7   : > { %756 = vmatmul.bf16.vlgmr.msrb.gmra.mxu1 %v4298_v24 }
  0xb8   : > { %845 = vmatmul.bf16.vlgmr.msrb.gmra.mxu2 %v4298_v24  ;;  %934 = vmatmul.bf16.vlgmr.msrb.gmra.mxu3 %v4298_v24  ;;  %v3617_v24 = vld [vmem:[#allocation10 + $0x38] sm:$0xff] }
  0xb9   : > { %2139 = vmatpush.bf16.msra.mxu0 %v3617_v24 }
  0xbd   : > { %2140 = vmatpush.bf16.msra.mxu0 %v3616_v16  ;;  %v3575_v16 = vld [vmem:[#allocation8 + $0x68] sm:$0xff] }
  0xbe   : > { %1682 = vmatpush.bf16.msra.mxu1 %v3575_v16  ;;  %v3590_v16 = vld [vmem:[#allocation8 + $0xe0] sm:$0xff] }
  0xc1   : > { %2141 = vmatpush.bf16.msra.mxu0 %v3615_v54 }
  0xc7   : > { %761 = vmatmul.bf16.gmra.mxu1 %v4314_v62 }
  0xc8   : > { %850 = vmatmul.bf16.gmra.mxu2 %v4314_v62  ;;  %939 = vmatmul.bf16.gmra.mxu3 %v4314_v62  ;;  %v3585_v62 = vld [vmem:[#allocation8 + $0xb8] sm:$0xff] }
  0xc9   : > { %1769 = vmatpush.bf16.msra.mxu2 %v3585_v62 }
  0xcd   : > { %1770 = vmatpush.bf16.msra.mxu2 %v3584_v33 }
  0xd7   : > { %766 = vmatmul.bf16.gmra.mxu1 %v3516_v42 }
  0xd8   : > { %855 = vmatmul.bf16.gmra.mxu2 %v3516_v42  ;;  %944 = vmatmul.bf16.gmra.mxu3 %v3516_v42 }
  0xe7   : > { %771 = vmatmul.bf16.gmra.mxu1 %v3517_v49 }
  0xe8   : > { %860 = vmatmul.bf16.gmra.mxu2 %v3517_v49  ;;  %949 = vmatmul.bf16.gmra.mxu3 %v3517_v49 }
  0xf4   : > { %v668_v60 = vpop.f32.mrf.mxu0  ;;  %v4361_v61 = vpop.f32.mrf.mxu1 }
  0xf5   : > { %v1015_v4 = vmax.f32 %v668_v60, 0.0 }
  0xf7   : > { %776 = vmatmul.bf16.gmra.mxu1 %v4301_v25  ;;  %v1143_v10 = vmul.f32 %v1015_v4, %v1015_v4 }
  0xf8   : > { %865 = vmatmul.bf16.gmra.mxu2 %v4301_v25  ;;  %954 = vmatmul.bf16.gmra.mxu3 %v4301_v25 }
  0xfb   : > { %v4366_v5 = vpop.f32.mrf.mxu2  ;;  %v4368_v6 = vpop.f32.mrf.mxu3 }
  0xfc   : > { %v670_v7 = vpop.f32.mrf.mxu0  ;;  %v4370_v8 = vpop.f32.mrf.mxu1 }
  0xfd   : > { %v1019_v9 = vmax.f32 %v670_v7, 0.0  ;;  %v1079_v7 = vmax.f32 %v4366_v5, 0.0 }
  0xff   : > { %v1147_v11 = vmul.f32 %v1019_v9, %v1019_v9  ;;  %v4432_v5 = vmul.f32 %v1079_v7, %v1079_v7 }
 0x101   : > { %v1271_v12 = vpack.c.bf16 %v1147_v11, %v1143_v10  ;;  %v3583_v10 = vld [vmem:[#allocation8 + $0xa8] sm:$0xff]  ;;  %v1111_v11 = vmax.f32 %v4368_v6, 0.0 }
 0x102   : > { %1771 = vmatpush.bf16.msra.mxu2 %v3583_v10 }
 0x103   : > { %v4372_v13 = vpop.f32.mrf.mxu2  ;;  %v4374_v25 = vpop.f32.mrf.mxu3  ;;  %1599 = vmatmul.bf16.vlgmr.msrb.gmra.mxu0 %v1271_v12 }
 0x104   : > { %v673_v14 = vpop.f32.mrf.mxu0  ;;  %v4376_v15 = vpop.f32.mrf.mxu1  ;;  %v1083_v9 = vmax.f32 %v4372_v13, 0.0  ;;  %v1115_v12 = vmax.f32 %v4374_v25, 0.0 }
 0x105   : > { %v1023_v17 = vmax.f32 %v673_v14, 0.0  ;;  %v3591_v14 = vld [vmem:[#allocation8 + $0xe8] sm:$0xff] }
 0x106   : > { %v4434_v13 = vmul.f32 %v1083_v9, %v1083_v9  ;;  %1860 = vmatpush.bf16.msra.mxu3 %v3591_v14 }
 0x107   : > { %781 = vmatmul.bf16.gmra.mxu1 %v4317_v63  ;;  %v1151_v23 = vmul.f32 %v1023_v17, %v1023_v17  ;;  %v1047_v17 = vmax.f32 %v4361_v61, 0.0 }
 0x108   : > { %870 = vmatmul.bf16.gmra.mxu2 %v4317_v63  ;;  %959 = vmatmul.bf16.gmra.mxu3 %v4317_v63 }
 0x109   : > { %v1175_v61 = vmul.f32 %v1047_v17, %v1047_v17  ;;  %v3574_v17 = vld [vmem:[#allocation8 + $0x60] sm:$0xff] }
 0x10a   : > { %1861 = vmatpush.bf16.msra.mxu3 %v3590_v16  ;;  %1683 = vmatpush.bf16.msra.mxu1 %v3574_v17 }
 0x10b   : > { %v4381_v18 = vpop.f32.mrf.mxu2  ;;  %v4383_v19 = vpop.f32.mrf.mxu3 }
 0x10c   : > { %v675_v20 = vpop.f32.mrf.mxu0  ;;  %v4385_v21 = vpop.f32.mrf.mxu1 }
 0x10d   : > { %v1027_v22 = vmax.f32 %v675_v20, 0.0  ;;  %v1051_v20 = vmax.f32 %v4370_v8, 0.0  ;;  %v1303_v8 = vpack.c.bf16 %v4434_v13, %v4432_v5  ;;  %v3588_v5 = vld [vmem:[#allocation8 + $0xd0] sm:$0xff] }
 0x10f   : > { %v1155_v28 = vmul.f32 %v1027_v22, %v1027_v22  ;;  %v4440_v22 = vmul.f32 %v1111_v11, %v1111_v11  ;;  %v3582_v11 = vld [vmem:[#allocation8 + $0xa0] sm:$0xff] }
 0x110   : > { %1772 = vmatpush.bf16.msra.mxu2 %v3582_v11 }
 0x111   : > { %v1275_v29 = vpack.c.bf16 %v1155_v28, %v1151_v23  ;;  %v1179_v28 = vmul.f32 %v1051_v20, %v1051_v20 }
 0x113   : > { %v4387_v30 = vpop.f32.mrf.mxu2  ;;  %v4389_v31 = vpop.f32.mrf.mxu3  ;;  %1604 = vmatmul.bf16.gmra.mxu0 %v1275_v29 }
 0x114   : > { %v678_v32 = vpop.f32.mrf.mxu0  ;;  %v4391_v63 = vpop.f32.mrf.mxu1 }
 0x115   : > { %v1031_v36 = vmax.f32 %v678_v32, 0.0  ;;  %v1287_v32 = vpack.c.bf16 %v1179_v28, %v1175_v61  ;;  %v1063_v20 = vmax.f32 %v4391_v63, 0.0 }
 0x117   : > { %786 = vmatmul.bf16.gmra.mxu1 %v4331_v43  ;;  %v1159_v42 = vmul.f32 %v1031_v36, %v1031_v36  ;;  %v1087_v36 = vmax.f32 %v4381_v18, 0.0  ;;  %v1191_v63 = vmul.f32 %v1063_v20, %v1063_v20 }
 0x118   : > { %875 = vmatmul.bf16.gmra.mxu2 %v4331_v43  ;;  %964 = vmatmul.bf16.gmra.mxu3 %v4331_v43 }
 0x119   : > { %v4465_v54 = vmul.f32 %v1087_v36, %v1087_v36 }
 0x11b   : > { %v4396_v37 = vpop.f32.mrf.mxu2  ;;  %v4398_v38 = vpop.f32.mrf.mxu3 }
 0x11c   : > { %v680_v39 = vpop.f32.mrf.mxu0  ;;  %v4400_v40 = vpop.f32.mrf.mxu1  ;;  %v1095_v9 = vmax.f32 %v4396_v37, 0.0 }
 0x11d   : > { %v1035_v41 = vmax.f32 %v680_v39, 0.0  ;;  %v1091_v39 = vmax.f32 %v4387_v30, 0.0  ;;  %v1067_v61 = vmax.f32 %v4400_v40, 0.0 }
 0x11e   : > { %v4498_v37 = vmul.f32 %v1095_v9, %v1095_v9 }
 0x11f   : > { %v1163_v46 = vmul.f32 %v1035_v41, %v1035_v41  ;;  %v3614_v41 = vld [vmem:[#allocation10 + $0x20] sm:$0xff]  ;;  %v4467_v18 = vmul.f32 %v1091_v39, %v1091_v39  ;;  %v1195_v36 = vmul.f32 %v1067_v61, %v1067_v61  ;;  %v3579_v39 = vld [vmem:[#allocation8 + $0x88] sm:$0xff] }
 0x120   : > { %2142 = vmatpush.bf16.msra.mxu0 %v3614_v41 }
 0x121   : > { %v1279_v47 = vpack.c.bf16 %v1163_v46, %v1159_v42  ;;  %v1119_v42 = vmax.f32 %v4383_v19, 0.0  ;;  %v1123_v46 = vmax.f32 %v4389_v31, 0.0  ;;  %v1295_v41 = vpack.c.bf16 %v1195_v36, %v1191_v63 }
 0x123   : > { %v4402_v48 = vpop.f32.mrf.mxu2  ;;  %v4404_v43 = vpop.f32.mrf.mxu3  ;;  %1609 = vmatmul.bf16.gmra.mxu0 %v1279_v47  ;;  %v1055_v47 = vmax.f32 %v4376_v15, 0.0  ;;  %v4473_v19 = vmul.f32 %v1119_v42, %v1119_v42  ;;  %v4475_v31 = vmul.f32 %v1123_v46, %v1123_v46  ;;  %v1307_v15 = vpack.c.bf16 %v4467_v18, %v4465_v54 }
 0x124   : > { %v683_v49 = vpop.f32.mrf.mxu0  ;;  %v4406_v53 = vpop.f32.mrf.mxu1  ;;  %v1099_v10 = vmax.f32 %v4402_v48, 0.0  ;;  %v1131_v14 = vmax.f32 %v4404_v43, 0.0 }
 0x125   : > { %v1039_v55 = vmax.f32 %v683_v49, 0.0  ;;  %v1059_v49 = vmax.f32 %v4385_v21, 0.0  ;;  %v3587_v21 = vld [vmem:[#allocation8 + $0xc8] sm:$0xff] }
 0x126   : > { %v4500_v48 = vmul.f32 %v1099_v10, %v1099_v10  ;;  %v1071_v10 = vmax.f32 %v4406_v53, 0.0  ;;  %v3570_v53 = vld [vmem:[#allocation8 + $0x40] sm:$0xff] }
 0x127   : > { %791 = vmatmul.bf16.gmra.mxu1 %v4344_v50  ;;  %v1167_v60 = vmul.f32 %v1039_v55, %v1039_v55 }
 0x128   : > { %880 = vmatmul.bf16.gmra.mxu2 %v4344_v50  ;;  %969 = vmatmul.bf16.gmra.mxu3 %v4344_v50  ;;  %v1311_v40 = vpack.c.bf16 %v4500_v48, %v4498_v37 }
 0x12b   : > { %v4411_v56 = vpop.f32.mrf.mxu2  ;;  %v4413_v57 = vpop.f32.mrf.mxu3 }
 0x12c   : > { %v685_v58 = vpop.f32.mrf.mxu0  ;;  %v4415_v59 = vpop.f32.mrf.mxu1 }
 0x12d   : > { %v1043_v24 = vmax.f32 %v685_v58, 0.0  ;;  %v1075_v11 = vmax.f32 %v4415_v59, 0.0  ;;  %v3580_v59 = vld [vmem:[#allocation8 + $0x90] sm:$0xff] }
 0x12f   : > { %v1171_v62 = vmul.f32 %v1043_v24, %v1043_v24  ;;  %v1187_v24 = vmul.f32 %v1059_v49, %v1059_v49  ;;  %v1103_v49 = vmax.f32 %v4411_v56, 0.0  ;;  %v1203_v17 = vmul.f32 %v1075_v11, %v1075_v11 }
 0x131   : > { %v1283_v2 = vpack.c.bf16 %v1171_v62, %v1167_v60 }
 0x133   : > { %v4417_v3 = vpop.f32.mrf.mxu2  ;;  %v4419_v4 = vpop.f32.mrf.mxu3  ;;  %1614 = vmatmul.bf16.gmra.mxu0 %v1283_v2 }
 0x134   : > { %v4421_v50 = vpop.f32.mrf.mxu1  ;;  %v1139_v9 = vmax.f32 %v4419_v4, 0.0 }
 0x135   : > { %v1016_v37 = vmax.f32 %v4421_v50, 0.0 }
 0x136   : > { %v4541_v4 = vmul.f32 %v1139_v9, %v1139_v9 }
 0x137   : > { %796 = vmatmul.bf16.gmra.mxu1 %v4304_v26 }
 0x138   : > { %885 = vmatmul.bf16.gmra.mxu2 %v4304_v26  ;;  %974 = vmatmul.bf16.gmra.mxu3 %v4304_v26  ;;  %v4442_v26 = vmul.f32 %v1115_v12, %v1115_v12  ;;  %v1127_v12 = vmax.f32 %v4398_v38, 0.0 }
 0x13a   : > { %v4506_v28 = vmul.f32 %v1127_v12, %v1127_v12  ;;  %v4531_v12 = vmul.f32 %v1103_v49, %v1103_v49  ;;  %v3589_v49 = vld [vmem:[#allocation8 + $0xd8] sm:$0xff] }
 0x13b   : > { %v4436_v6 = vpop.f32.mrf.mxu2  ;;  %v4438_v25 = vpop.f32.mrf.mxu3  ;;  %1862 = vmatpush.bf16.msra.mxu3 %v3589_v49 }
 0x13c   : > { %v4444_v23 = vpop.f32.mrf.mxu1 }
 0x13d   : > { %v1020_v48 = vmax.f32 %v4444_v23, 0.0 }
 0x13f   : > { %1863 = vmatpush.bf16.msra.mxu3 %v3588_v5 }
 0x143   : > { %v4450_v33 = vpop.f32.mrf.mxu2  ;;  %v4452_v34 = vpop.f32.mrf.mxu3  ;;  %1619 = vmatmul.bf16.gmra.mxu0 %v1287_v32  ;;  %1864 = vmatpush.bf16.msra.mxu3 %v3587_v21 }
 0x144   : > { %v4454_v35 = vpop.f32.mrf.mxu1 }
 0x147   : > { %801 = vmatmul.bf16.gmra.mxu1 %v4320_v0 }
 0x148   : > { %890 = vmatmul.bf16.gmra.mxu2 %v4320_v0  ;;  %979 = vmatmul.bf16.gmra.mxu3 %v4320_v0  ;;  %v1183_v0 = vmul.f32 %v1055_v47, %v1055_v47 }
 0x14a   : > { %v1291_v60 = vpack.c.bf16 %v1187_v24, %v1183_v0  ;;  %v1107_v0 = vmax.f32 %v4417_v3, 0.0  ;;  %v3613_v24 = vld [vmem:[#allocation10 + $0x18] sm:$0xff] }
 0x14b   : > { %v4469_v30 = vpop.f32.mrf.mxu2  ;;  %v4471_v55 = vpop.f32.mrf.mxu3  ;;  %2143 = vmatpush.bf16.msra.mxu0 %v3613_v24 }
 0x14c   : > { %v4477_v58 = vpop.f32.mrf.mxu1  ;;  %v4533_v56 = vmul.f32 %v1107_v0, %v1107_v0  ;;  %v3573_v0 = vld [vmem:[#allocation8 + $0x58] sm:$0xff] }
 0x14d   : > { %1684 = vmatpush.bf16.msra.mxu1 %v3573_v0  ;;  %v3572_v0 = vld [vmem:[#allocation8 + $0x50] sm:$0xff] }
 0x151   : > { %1685 = vmatpush.bf16.msra.mxu1 %v3572_v0  ;;  %v3578_v0 = vld [vmem:[#allocation8 + $0x80] sm:$0xff] }
 0x153   : > { %v4483_v62 = vpop.f32.mrf.mxu2  ;;  %v4485_v2 = vpop.f32.mrf.mxu3  ;;  %1624 = vmatmul.bf16.gmra.mxu0 %v1291_v60  ;;  %v1135_v60 = vmax.f32 %v4413_v57, 0.0 }
 0x154   : > { %v4487_v7 = vpop.f32.mrf.mxu1 }
 0x155   : > { %v4539_v57 = vmul.f32 %v1135_v60, %v1135_v60 }
 0x157   : > { %806 = vmatmul.bf16.gmra.mxu1 %v4334_v44 }
 0x158   : > { %895 = vmatmul.bf16.gmra.mxu2 %v4334_v44  ;;  %984 = vmatmul.bf16.gmra.mxu3 %v4334_v44  ;;  %v4508_v44 = vmul.f32 %v1131_v14, %v1131_v14 }
 0x15b   : > { %v4502_v38 = vpop.f32.mrf.mxu2  ;;  %v4504_v43 = vpop.f32.mrf.mxu3 }
 0x15c   : > { %v4510_v32 = vpop.f32.mrf.mxu1 }
 0x163   : > { %v4516_v42 = vpop.f32.mrf.mxu2  ;;  %v4518_v46 = vpop.f32.mrf.mxu3  ;;  %1629 = vmatmul.bf16.gmra.mxu0 %v1295_v41  ;;  %v3581_v41 = vld [vmem:[#allocation8 + $0x98] sm:$0xff] }
 0x164   : > { %v4520_v47 = vpop.f32.mrf.mxu1  ;;  %1773 = vmatpush.bf16.msra.mxu2 %v3581_v41 }
 0x167   : > { %811 = vmatmul.bf16.gmra.mxu1 %v4347_v51 }
 0x168   : > { %900 = vmatmul.bf16.gmra.mxu2 %v4347_v51  ;;  %989 = vmatmul.bf16.gmra.mxu3 %v4347_v51  ;;  %v1199_v51 = vmul.f32 %v1071_v10, %v1071_v10 }
 0x169   : > { %1774 = vmatpush.bf16.msra.mxu2 %v3580_v59  ;;  %v3586_v59 = vld [vmem:[#allocation8 + $0xc0] sm:$0xff] }
 0x16a   : > { %v1299_v20 = vpack.c.bf16 %v1203_v17, %v1199_v51  ;;  %v3612_v17 = vld [vmem:[#allocation10 + $0x10] sm:$0xff]  ;;  %1865 = vmatpush.bf16.msra.mxu3 %v3586_v59 }
 0x16b   : > { %v4535_v3 = vpop.f32.mrf.mxu2  ;;  %v4537_v14 = vpop.f32.mrf.mxu3  ;;  %2144 = vmatpush.bf16.msra.mxu0 %v3612_v17 }
 0x16c   : > { %v4543_v16 = vpop.f32.mrf.mxu1 }
 0x16d   : > { %1775 = vmatpush.bf16.msra.mxu2 %v3579_v39 }
 0x171   : > { %1776 = vmatpush.bf16.msra.mxu2 %v3578_v0 }
 0x173   : > { %v4549_v61 = vpop.f32.mrf.mxu2  ;;  %v4551_v63 = vpop.f32.mrf.mxu3  ;;  %1634 = vmatmul.bf16.gmra.mxu0 %v1299_v20 }
 0x174   : > { %v4553_v36 = vpop.f32.mrf.mxu1 }
 0x177   : > { %816 = vmatmul.bf16.gmra.mxu1 %v4307_v27 }
 0x178   : > { %905 = vmatmul.bf16.gmra.mxu2 %v4307_v27  ;;  %994 = vmatmul.bf16.gmra.mxu3 %v4307_v27 }
 0x17b   : > { %v4558_v24 = vpop.f32.mrf.mxu2  ;;  %v4560_v60 = vpop.f32.mrf.mxu3 }
 0x17c   : > { %v4562_v9 = vpop.f32.mrf.mxu1 }
 0x180   : > { %v4564_v10 = vpop.f32.mrf.mxu0 }
 0x181   : > { %5261 = vst [vmem:[#allocation17_spill] sm:$0xff] %v4564_v10  ;;  %v1021_v10 = vmax.f32 %v4450_v33, 0.0 }
 0x183   : > { %v4566_v11 = vpop.f32.mrf.mxu2  ;;  %v4568_v51 = vpop.f32.mrf.mxu3  ;;  %1639 = vmatmul.bf16.gmra.mxu0 %v1303_v8  ;;  %v3571_v8 = vld [vmem:[#allocation8 + $0x48] sm:$0xff] }
 0x184   : > { %v4573_v27 = vpop.f32.mrf.mxu1  ;;  %1686 = vmatpush.bf16.msra.mxu1 %v3571_v8 }
 0x187   : > { %821 = vmatmul.bf16.gmra.mxu1 %v4323_v1 }
 0x188   : > { %910 = vmatmul.bf16.gmra.mxu2 %v4323_v1  ;;  %999 = vmatmul.bf16.gmra.mxu3 %v4323_v1  ;;  %v4578_v20 = vpop.f32.mrf.mxu0 }
 0x189   : > { %5262 = vst [vmem:[#allocation18_spill] sm:$0xff] %v4578_v20  ;;  %1687 = vmatpush.bf16.msra.mxu1 %v3570_v53  ;;  %v1018_v20 = vmax.f32 %v4438_v25, 0.0 }
 0x18b   : > { %v4580_v41 = vpop.f32.mrf.mxu2  ;;  %v4582_v49 = vpop.f32.mrf.mxu3 }
 0x18c   : > { %v4584_v13 = vpop.f32.mrf.mxu1 }
 0x190   : > { %v4586_v29 = vpop.f32.mrf.mxu0 }
 0x191   : > { %5263 = vst [vmem:[#allocation19_spill] sm:$0xff] %v4586_v29 }
 0x193   : > { %v4588_v1 = vpop.f32.mrf.mxu2  ;;  %v4590_v17 = vpop.f32.mrf.mxu3  ;;  %1644 = vmatmul.bf16.gmra.mxu0 %v1307_v15 }
 0x194   : > { %v4595_v5 = vpop.f32.mrf.mxu1 }
 0x197   : > { %826 = vmatmul.bf16.gmra.mxu1 %v4337_v45 }
 0x198   : > { %915 = vmatmul.bf16.gmra.mxu2 %v4337_v45  ;;  %1004 = vmatmul.bf16.gmra.mxu3 %v4337_v45  ;;  %v4600_v21 = vpop.f32.mrf.mxu0  ;;  %v3611_v45 = vld [vmem:[#allocation10 + $0x8] sm:$0xff] }
 0x199   : > { %5264 = vst [vmem:[#allocation20_spill] sm:$0xff] %v4600_v21  ;;  %2145 = vmatpush.bf16.msra.mxu0 %v3611_v45  ;;  %v1144_v45 = vmul.f32 %v1016_v37, %v1016_v37 }
 0x19b   : > { %v4602_v39 = vpop.f32.mrf.mxu2  ;;  %v4604_v54 = vpop.f32.mrf.mxu3 }
 0x19c   : > { %v4606_v18 = vpop.f32.mrf.mxu1 }
 0x1a0   : > { %v4608_v15 = vpop.f32.mrf.mxu0 }
 0x1a1   : > { %5265 = vst [vmem:[#allocation21_spill] sm:$0xff] %v4608_v15 }
 0x1a3   : > { %v4610_v8 = vpop.f32.mrf.mxu2  ;;  %v4612_v53 = vpop.f32.mrf.mxu3  ;;  %1649 = vmatmul.bf16.gmra.mxu0 %v1311_v40  ;;  %v1017_v40 = vmax.f32 %v4436_v6, 0.0  ;;  %v5273_v6 = vpack.c.bf16 %v4533_v56, %v4531_v12  ;;  %v1025_v12 = vmax.f32 %v4469_v30, 0.0  ;;  %v1026_v56 = vmax.f32 %v4471_v55, 0.0 }
 0x1a4   : > { %5266 = vst [vmem:[#allocation22_spill] sm:$0xff] %v4610_v8  ;;  %v4617_v0 = vpop.f32.mrf.mxu1  ;;  %v5275_v30 = vpack.c.bf16 %v4442_v26, %v4440_v22  ;;  %v1036_v22 = vmax.f32 %v4510_v32, 0.0  ;;  %v1033_v26 = vmax.f32 %v4502_v38, 0.0  ;;  %v5276_v38 = vpack.c.bf16 %v4475_v31, %v4473_v19 }
 0x1a5   : > { %5267 = vst [vmem:[#allocation23_spill] sm:$0xff] %v4612_v53  ;;  %v1149_v53 = vmul.f32 %v1021_v10, %v1021_v10  ;;  %v1041_v19 = vmax.f32 %v4535_v3, 0.0  ;;  %v1042_v31 = vmax.f32 %v4537_v14, 0.0 }
 0x1a6   : > { %5268 = vst [vmem:[#allocation24_spill] sm:$0xff] %v4617_v0  ;;  %v1145_v0 = vmul.f32 %v1017_v40, %v1017_v40  ;;  %v1028_v40 = vmax.f32 %v4477_v58, 0.0 }
 0x1a7   : > { %831 = vmatmul.bf16.gmra.mxu1 %v4350_v52 }
 0x1a8   : > { %920 = vmatmul.bf16.gmra.mxu2 %v4350_v52  ;;  %1009 = vmatmul.bf16.gmra.mxu3 %v4350_v52  ;;  %v4622_v59 = vpop.f32.mrf.mxu0  ;;  %v1022_v52 = vmax.f32 %v4452_v34, 0.0  ;;  %v1273_v33 = vpack.c.bf16 %v1149_v53, %v1145_v0 }
 0x1a9   : > { %5269 = vst [vmem:[#allocation25_spill] sm:$0xff] %v4622_v59 }
 0x1ab   : > { %v4624_v15 = vpop.f32.mrf.mxu2  ;;  %v4626_v21 = vpop.f32.mrf.mxu3 }
 0x1ac   : > { %5270 = vst [vmem:[#allocation26_spill] sm:$0xff] %v4624_v15  ;;  %v4628_v29 = vpop.f32.mrf.mxu1  ;;  %v1148_v15 = vmul.f32 %v1020_v48, %v1020_v48  ;;  %v1024_v48 = vmax.f32 %v4454_v35, 0.0 }
 0x1ad   : > { %5271 = vst [vmem:[#allocation27_spill] sm:$0xff] %v4626_v21  ;;  %v1146_v21 = vmul.f32 %v1018_v20, %v1018_v20 }
 0x1ae   : > { %5272 = vst [vmem:[#allocation28_spill] sm:$0xff] %v4628_v29  ;;  %v1150_v29 = vmul.f32 %v1022_v52, %v1022_v52  ;;  %v1272_v23 = vpack.c.bf16 %v1148_v15, %v1144_v45  ;;  %v1029_v15 = vmax.f32 %v4483_v62, 0.0  ;;  %v1152_v0 = vmul.f32 %v1024_v48, %v1024_v48 }
 0x1af   : > { %v1156_v52 = vmul.f32 %v1028_v40, %v1028_v40  ;;  %v1153_v45 = vmul.f32 %v1025_v12, %v1025_v12  ;;  %v1032_v12 = vmax.f32 %v4487_v7, 0.0 }
 0x1b0   : > { %v4636_v59 = vpop.f32.mrf.mxu0  ;;  %v1274_v34 = vpack.c.bf16 %v1150_v29, %v1146_v21  ;;  %v1030_v29 = vmax.f32 %v4485_v2, 0.0 }
 0x1b1   : > { %v1276_v55 = vpack.c.bf16 %v1156_v52, %v1152_v0 }
 0x1b2   : > { %v1158_v35 = vmul.f32 %v1030_v29, %v1030_v29  ;;  %v1038_v29 = vmax.f32 %v4518_v46, 0.0 }
 0x1b3   : > { %v4638_v8 = vpop.f32.mrf.mxu2  ;;  %v4640_v50 = vpop.f32.mrf.mxu3  ;;  %1654 = vmatmul.bf16.gmra.mxu0 %v5273_v6  ;;  %v1154_v6 = vmul.f32 %v1026_v56, %v1026_v56  ;;  %v1034_v56 = vmax.f32 %v4504_v43, 0.0 }
 0x1b4   : > { %v4645_v25 = vpop.f32.mrf.mxu1  ;;  %v1166_v7 = vmul.f32 %v1038_v29, %v1038_v29 }
 0x1b5   : > { %v1278_v2 = vpack.c.bf16 %v1158_v35, %v1154_v6  ;;  %v1164_v6 = vmul.f32 %v1036_v22, %v1036_v22  ;;  %v1162_v35 = vmul.f32 %v1034_v56, %v1034_v56  ;;  %v1044_v22 = vmax.f32 %v4543_v16, 0.0 }
 0x1b6   : > { %v1046_v56 = vmax.f32 %v4551_v63, 0.0  ;;  %v5277_v16 = vpack.c.bf16 %v4508_v44, %v4506_v28  ;;  %v1049_v28 = vmax.f32 %v4558_v24, 0.0  ;;  %v1050_v44 = vmax.f32 %v4560_v60, 0.0 }
 0x1b7   : > { %1688 = vmatmul.bf16.vlgmr.msra.gmra.mxu1 %v1272_v23  ;;  %v1157_v23 = vmul.f32 %v1029_v15, %v1029_v15  ;;  %v1037_v15 = vmax.f32 %v4516_v42, 0.0  ;;  %v1282_v46 = vpack.c.bf16 %v1166_v7, %v1162_v35  ;;  %v1170_v35 = vmul.f32 %v1042_v31, %v1042_v31 }
 0x1b8   : > { %1777 = vmatmul.bf16.vlgmr.msra.gmra.mxu2 %v1273_v33  ;;  %1866 = vmatmul.bf16.vlgmr.msra.gmra.mxu3 %v1274_v34  ;;  %v4647_v37 = vpop.f32.mrf.mxu0  ;;  %v3610_v34 = vld [vmem:[#allocation10] sm:$0xff]  ;;  %v5278_v24 = vpack.c.bf16 %v4541_v4, %v4539_v57  ;;  %v1060_v57 = vmax.f32 %v4584_v13, 0.0  ;;  %v1057_v4 = vmax.f32 %v4580_v41, 0.0 }
 0x1b9   : > { %v1277_v62 = vpack.c.bf16 %v1157_v23, %v1153_v45  ;;  %2146 = vmatpush.bf16.msra.mxu0 %v3610_v34  ;;  %v1160_v45 = vmul.f32 %v1032_v12, %v1032_v12  ;;  %v1161_v23 = vmul.f32 %v1033_v26, %v1033_v26  ;;  %v1040_v12 = vmax.f32 %v4520_v47, 0.0 }
 0x1ba   : > { %v1045_v26 = vmax.f32 %v4549_v61, 0.0  ;;  %v1174_v47 = vmul.f32 %v1046_v56, %v1046_v56 }
 0x1bb   : > { %v4649_v10 = vpop.f32.mrf.mxu2  ;;  %v4651_v20 = vpop.f32.mrf.mxu3  ;;  %v1280_v32 = vpack.c.bf16 %v1164_v6, %v1160_v45  ;;  %v1168_v45 = vmul.f32 %v1040_v12, %v1040_v12  ;;  %v1172_v6 = vmul.f32 %v1044_v22, %v1044_v22  ;;  %v1053_v12 = vmax.f32 %v4566_v11, 0.0 }
 0x1bc   : > { %v4659_v21 = vpop.f32.mrf.mxu1  ;;  %v1286_v7 = vpack.c.bf16 %v1174_v47, %v1170_v35  ;;  %v1054_v22 = vmax.f32 %v4568_v51, 0.0 }
 0x1bd   : > { %v1284_v14 = vpack.c.bf16 %v1172_v6, %v1168_v45  ;;  %v1177_v6 = vmul.f32 %v1049_v28, %v1049_v28  ;;  %v3594_v28 = vld [vmem:[%s4283_s28] sm:$0xff] }
 0x1c0   : > { %v4661_v53 = vpop.f32.mrf.mxu0 }
 0x1c1   : > { %5274 = vst [vmem:[#allocation29_spill] sm:$0xff] %v4661_v53 }
 0x1c3   : > { %v4663_v33 = vpop.f32.mrf.mxu2  ;;  %1659 = vmatmul.bf16.gmra.mxu0 %v5275_v30  ;;  %v4668_v58 = vpop.f32.mrf.mxu3  ;;  %v1165_v30 = vmul.f32 %v1037_v15, %v1037_v15 }
 0x1c4   : > { %v4670_v53 = vpop.f32.mrf.mxu1 }
 0x1c5   : > { %v1281_v42 = vpack.c.bf16 %v1165_v30, %v1161_v23  ;;  %v1169_v23 = vmul.f32 %v1041_v19, %v1041_v19  ;;  %v1173_v30 = vmul.f32 %v1045_v26, %v1045_v26 }
 0x1c7   : > { %1693 = vmatmul.bf16.gmra.mxu1 %v1276_v55  ;;  %v1285_v63 = vpack.c.bf16 %v1173_v30, %v1169_v23  ;;  %v1181_v23 = vmul.f32 %v1053_v12, %v1053_v12 }
 0x1c8   : > { %1782 = vmatmul.bf16.gmra.mxu2 %v1277_v62  ;;  %1871 = vmatmul.bf16.gmra.mxu3 %v1278_v2  ;;  %v4672_v48 = vpop.f32.mrf.mxu0 }
 0x1c9   : > { %v1289_v11 = vpack.c.bf16 %v1181_v23, %v1177_v6 }
 0x1cb   : > { %v4674_v40 = vpop.f32.mrf.mxu2  ;;  %v4682_v0 = vpop.f32.mrf.mxu3 }
 0x1cc   : > { %v4686_v55 = vpop.f32.mrf.mxu1 }
 0x1d0   : > { %v4684_v52 = vpop.f32.mrf.mxu0 }
 0x1d3   : > { %1664 = vmatmul.bf16.gmra.mxu0 %v5276_v38  ;;  %v4691_v43 = vpop.f32.mrf.mxu2  ;;  %v4695_v2 = vpop.f32.mrf.mxu3 }
 0x1d4   : > { %v4697_v34 = vpop.f32.mrf.mxu1 }
 0x1d7   : > { %1698 = vmatmul.bf16.gmra.mxu1 %v1280_v32 }
 0x1d8   : > { %1787 = vmatmul.bf16.gmra.mxu2 %v1281_v42  ;;  %1876 = vmatmul.bf16.gmra.mxu3 %v1282_v46  ;;  %v4693_v62 = vpop.f32.mrf.mxu0  ;;  %v1048_v42 = vmax.f32 %v4553_v36, 0.0  ;;  %v1052_v46 = vmax.f32 %v4562_v9, 0.0  ;;  %v1178_v36 = vmul.f32 %v1050_v44, %v1050_v44  ;;  %v1182_v9 = vmul.f32 %v1054_v22, %v1054_v22 }
 0x1d9   : > { %v1188_v22 = vmul.f32 %v1060_v57, %v1060_v57 }
 0x1da   : > { %v1176_v56 = vmul.f32 %v1048_v42, %v1048_v42  ;;  %v1180_v45 = vmul.f32 %v1052_v46, %v1052_v46  ;;  %v1290_v51 = vpack.c.bf16 %v1182_v9, %v1178_v36  ;;  %v1061_v42 = vmax.f32 %v4588_v1, 0.0 }
 0x1db   : > { %v4705_v15 = vpop.f32.mrf.mxu2  ;;  %v4712_v3 = vpop.f32.mrf.mxu3  ;;  %v1062_v46 = vmax.f32 %v4590_v17, 0.0 }
 0x1dc   : > { %v4714_v61 = vpop.f32.mrf.mxu1  ;;  %v1288_v60 = vpack.c.bf16 %v1180_v45, %v1176_v56  ;;  %v1185_v56 = vmul.f32 %v1057_v4, %v1057_v4  ;;  %v1189_v6 = vmul.f32 %v1061_v42, %v1061_v42  ;;  %v5280_v4 = vld [vmem:[#allocation23_spill] sm:$0xff] }
 0x1dd   : > { %v1190_v36 = vmul.f32 %v1062_v46, %v1062_v46  ;;  %v3595_v46 = vld [vmem:[%s4283_s28 + $0x8] sm:$0xff] }
 0x1de   : > { %v1293_v1 = vpack.c.bf16 %v1189_v6, %v1185_v56 }
 0x1e0   : > { %v4707_v29 = vpop.f32.mrf.mxu0 }
 0x1e3   : > { %1669 = vmatmul.bf16.gmra.mxu0 %v5277_v16  ;;  %v4716_v38 = vpop.f32.mrf.mxu2  ;;  %v4726_v19 = vpop.f32.mrf.mxu3 }
 0x1e4   : > { %v4728_v31 = vpop.f32.mrf.mxu1 }
 0x1e7   : > { %1703 = vmatmul.bf16.gmra.mxu1 %v1284_v14 }
 0x1e8   : > { %1792 = vmatmul.bf16.gmra.mxu2 %v1285_v63  ;;  %1881 = vmatmul.bf16.gmra.mxu3 %v1286_v7  ;;  %v4718_v32 = vpop.f32.mrf.mxu0  ;;  %v1056_v63 = vmax.f32 %v4573_v27, 0.0  ;;  %v1058_v7 = vmax.f32 %v4582_v49, 0.0 }
 0x1ea   : > { %v1184_v12 = vmul.f32 %v1056_v63, %v1056_v63  ;;  %v1186_v45 = vmul.f32 %v1058_v7, %v1058_v7  ;;  %v5279_v63 = vld [vmem:[#allocation22_spill] sm:$0xff]  ;;  %v1070_v7 = vmax.f32 %v5280_v4, 0.0 }
 0x1eb   : > { %v4732_v35 = vpop.f32.mrf.mxu2  ;;  %v4737_v30 = vpop.f32.mrf.mxu3  ;;  %v1069_v57 = vmax.f32 %v5279_v63, 0.0 }
 0x1ec   : > { %v4741_v16 = vpop.f32.mrf.mxu1  ;;  %v1292_v41 = vpack.c.bf16 %v1188_v22, %v1184_v12  ;;  %v1294_v17 = vpack.c.bf16 %v1190_v36, %v1186_v45  ;;  %v1198_v6 = vmul.f32 %v1070_v7, %v1070_v7  ;;  %v5286_v7 = vld [vmem:[#allocation27_spill] sm:$0xff] }
 0x1f0   : > { %v4730_v26 = vpop.f32.mrf.mxu0 }
 0x1f3   : > { %1674 = vmatmul.bf16.gmra.mxu0 %v5278_v24  ;;  %v4743_v14 = vpop.f32.mrf.mxu2  ;;  %v4754_v27 = vpop.f32.mrf.mxu3  ;;  %v1064_v24 = vmax.f32 %v4595_v5, 0.0 }
 0x1f4   : > { %v4756_v13 = vpop.f32.mrf.mxu1 }
 0x1f5   : > { %v1192_v22 = vmul.f32 %v1064_v24, %v1064_v24 }
 0x1f7   : > { %1708 = vmatmul.bf16.gmra.mxu1 %v1288_v60  ;;  %v1068_v60 = vmax.f32 %v4606_v18, 0.0  ;;  %v1197_v18 = vmul.f32 %v1069_v57, %v1069_v57  ;;  %v5285_v57 = vld [vmem:[#allocation26_spill] sm:$0xff] }
 0x1f8   : > { %1797 = vmatmul.bf16.gmra.mxu2 %v1289_v11  ;;  %1886 = vmatmul.bf16.gmra.mxu3 %v1290_v51  ;;  %v4739_v47 = vpop.f32.mrf.mxu0  ;;  %v1065_v11 = vmax.f32 %v4602_v39, 0.0  ;;  %v1066_v51 = vmax.f32 %v4604_v54, 0.0  ;;  %v1073_v4 = vmax.f32 %v5285_v57, 0.0 }
 0x1f9   : > { %v1196_v56 = vmul.f32 %v1068_v60, %v1068_v60  ;;  %v5283_v60 = vld [vmem:[#allocation24_spill] sm:$0xff] }
 0x1fa   : > { %v1193_v5 = vmul.f32 %v1065_v11, %v1065_v11  ;;  %v1194_v45 = vmul.f32 %v1066_v51, %v1066_v51  ;;  %v1072_v11 = vmax.f32 %v5283_v60, 0.0  ;;  %v5284_v51 = vld [vmem:[#allocation28_spill] sm:$0xff] }
 0x1fb   : > { %v4758_v49 = vpop.f32.mrf.mxu2  ;;  %v4762_v9 = vpop.f32.mrf.mxu3  ;;  %v1296_v39 = vpack.c.bf16 %v1196_v56, %v1192_v22  ;;  %v1076_v63 = vmax.f32 %v5284_v51, 0.0  ;;  %v1077_v22 = vmax.f32 %v4638_v8, 0.0  ;;  %v1078_v56 = vmax.f32 %v4640_v50, 0.0 }
 0x1fc   : > { %v4770_v42 = vpop.f32.mrf.mxu1  ;;  %v1297_v36 = vpack.c.bf16 %v1197_v18, %v1193_v5  ;;  %v3596_v5 = vld [vmem:[%s4283_s28 + $0x10] sm:$0xff] }
 0x1fd   : > { %v1205_v60 = vmul.f32 %v1077_v22, %v1077_v22  ;;  %v1081_v22 = vmax.f32 %v4649_v10, 0.0 }
 0x200   : > { %v4752_v44 = vpop.f32.mrf.mxu0 }
 0x203   : > { %2147 = vmatmul.bf16.vlgmr.msra.gmra.mxu0 %v3594_v28  ;;  %v4773_v28 = vpop.f32.mrf.mxu2  ;;  %v4777_v54 = vpop.f32.mrf.mxu3 }
 0x207   : > { %1713 = vmatmul.bf16.gmra.mxu1 %v1292_v41  ;;  %v1298_v41 = vpack.c.bf16 %v1198_v6, %v1194_v45  ;;  %v1200_v6 = vmul.f32 %v1072_v11, %v1072_v11 }
 0x208   : > { %1802 = vmatmul.bf16.gmra.mxu2 %v1293_v1  ;;  %1891 = vmatmul.bf16.gmra.mxu3 %v1294_v17  ;;  %v4760_v23 = vpop.f32.mrf.mxu0  ;;  %v4779_v1 = vpop.f32.mrf.mxu1 }
 0x20b   : > { %v4783_v24 = vpop.f32.mrf.mxu2  ;;  %v4792_v45 = vpop.f32.mrf.mxu3 }
 0x210   : > { %v4775_v12 = vpop.f32.mrf.mxu0  ;;  %v4796_v51 = vpop.f32.mrf.mxu1 }
 0x211   : > { %5281 = vst [vmem:[#allocation22_spill] sm:$0xff] %v4775_v12 }
 0x213   : > { %2152 = vmatmul.bf16.gmra.mxu0 %v3595_v46  ;;  %v1074_v46 = vmax.f32 %v5286_v7, 0.0  ;;  %v4798_v57 = vpop.f32.mrf.mxu2  ;;  %v4802_v11 = vpop.f32.mrf.mxu3 }
 0x217   : > { %1718 = vmatmul.bf16.gmra.mxu1 %v1296_v39  ;;  %v1204_v39 = vmul.f32 %v1076_v63, %v1076_v63 }
 0x218   : > { %1807 = vmatmul.bf16.gmra.mxu2 %v1297_v36  ;;  %1896 = vmatmul.bf16.gmra.mxu3 %v1298_v41  ;;  %v4781_v17 = vpop.f32.mrf.mxu0  ;;  %v1201_v36 = vmul.f32 %v1073_v4, %v1073_v4  ;;  %v1202_v41 = vmul.f32 %v1074_v46, %v1074_v46  ;;  %v4804_v63 = vpop.f32.mrf.mxu1  ;;  %v1080_v4 = vmax.f32 %v4645_v25, 0.0  ;;  %v1084_v46 = vmax.f32 %v4659_v21, 0.0 }
 0x219   : > { %5282 = vst [vmem:[#allocation23_spill] sm:$0xff] %v4781_v17  ;;  %v1206_v17 = vmul.f32 %v1078_v56, %v1078_v56  ;;  %v1300_v7 = vpack.c.bf16 %v1204_v39, %v1200_v6  ;;  %v1082_v56 = vmax.f32 %v4651_v20, 0.0  ;;  %v3597_v39 = vld [vmem:[%s4283_s28 + $0x18] sm:$0xff] }
 0x21a   : > { %v1301_v8 = vpack.c.bf16 %v1205_v60, %v1201_v36  ;;  %v1212_v60 = vmul.f32 %v1084_v46, %v1084_v46  ;;  %v1088_v46 = vmax.f32 %v4670_v53, 0.0 }
 0x21b   : > { %v1302_v50 = vpack.c.bf16 %v1206_v17, %v1202_v41  ;;  %v1086_v17 = vmax.f32 %v4668_v58, 0.0  ;;  %v4812_v6 = vpop.f32.mrf.mxu2  ;;  %v1208_v41 = vmul.f32 %v1080_v4, %v1080_v4  ;;  %v4817_v21 = vpop.f32.mrf.mxu3 }
 0x21d   : > { %v1304_v10 = vpack.c.bf16 %v1212_v60, %v1208_v41  ;;  %v3598_v60 = vld [vmem:[%s4283_s28 + $0x20] sm:$0xff] }
 0x220   : > { %v4794_v18 = vpop.f32.mrf.mxu0  ;;  %v4819_v20 = vpop.f32.mrf.mxu1 }
 0x223   : > { %2157 = vmatmul.bf16.gmra.mxu0 %v3596_v5  ;;  %v1085_v5 = vmax.f32 %v4663_v33, 0.0  ;;  %v4831_v41 = vpop.f32.mrf.mxu3 }
 0x225   : > { %v1213_v25 = vmul.f32 %v1085_v5, %v1085_v5  ;;  %v1090_v5 = vmax.f32 %v4682_v0, 0.0 }
 0x227   : > { %1723 = vmatmul.bf16.gmra.mxu1 %v1300_v7  ;;  %v1209_v7 = vmul.f32 %v1081_v22, %v1081_v22  ;;  %v1092_v22 = vmax.f32 %v4686_v55, 0.0 }
 0x228   : > { %1812 = vmatmul.bf16.gmra.mxu2 %v1301_v8  ;;  %1901 = vmatmul.bf16.gmra.mxu3 %v1302_v50  ;;  %v4800_v12 = vpop.f32.mrf.mxu0  ;;  %v1210_v8 = vmul.f32 %v1082_v56, %v1082_v56  ;;  %v1214_v50 = vmul.f32 %v1086_v17, %v1086_v17  ;;  %v1089_v56 = vmax.f32 %v4674_v40, 0.0  ;;  %v1093_v17 = vmax.f32 %v4691_v43, 0.0 }
 0x229   : > { %5287 = vst [vmem:[#allocation24_spill] sm:$0xff] %v4800_v12  ;;  %v1305_v33 = vpack.c.bf16 %v1213_v25, %v1209_v7  ;;  %v4821_v12 = vpop.f32.mrf.mxu2  ;;  %v4834_v7 = vpop.f32.mrf.mxu1  ;;  %v1216_v25 = vmul.f32 %v1088_v46, %v1088_v46 }
 0x22a   : > { %v1306_v58 = vpack.c.bf16 %v1214_v50, %v1210_v8  ;;  %v1220_v50 = vmul.f32 %v1092_v22, %v1092_v22  ;;  %v1217_v53 = vmul.f32 %v1089_v56, %v1089_v56  ;;  %v1221_v55 = vmul.f32 %v1093_v17, %v1093_v17 }
 0x22b   : > { %v1096_v56 = vmax.f32 %v4697_v34, 0.0  ;;  %v1097_v17 = vmax.f32 %v4705_v15, 0.0 }
 0x22c   : > { %v1308_v0 = vpack.c.bf16 %v1220_v50, %v1216_v25  ;;  %v1309_v43 = vpack.c.bf16 %v1221_v55, %v1217_v53  ;;  %v1102_v25 = vmax.f32 %v4726_v19, 0.0  ;;  %v3599_v50 = vld [vmem:[%s4283_s28 + $0x28] sm:$0xff] }
 0x230   : > { %v4815_v36 = vpop.f32.mrf.mxu0 }
 0x231   : > { %v4838_v40 = vpop.f32.mrf.mxu2  ;;  %v4844_v46 = vpop.f32.mrf.mxu1 }
 0x233   : > { %2162 = vmatmul.bf16.gmra.mxu0 %v3597_v39  ;;  %v1094_v39 = vmax.f32 %v4695_v2, 0.0 }
 0x237   : > { %1728 = vmatmul.bf16.gmra.mxu1 %v1304_v10  ;;  %v1218_v10 = vmul.f32 %v1090_v5, %v1090_v5  ;;  %v1100_v5 = vmax.f32 %v4714_v61, 0.0 }
 0x238   : > { %1817 = vmatmul.bf16.gmra.mxu2 %v1305_v33  ;;  %1906 = vmatmul.bf16.gmra.mxu3 %v1306_v58  ;;  %v4823_v4 = vpop.f32.mrf.mxu0  ;;  %v1222_v33 = vmul.f32 %v1094_v39, %v1094_v39  ;;  %v4840_v58 = vpop.f32.mrf.mxu3  ;;  %v1098_v39 = vmax.f32 %v4712_v3, 0.0 }
 0x239   : > { %5288 = vst [vmem:[#allocation28_spill] sm:$0xff] %v4823_v4  ;;  %v4846_v22 = vpop.f32.mrf.mxu2  ;;  %v1228_v55 = vmul.f32 %v1100_v5, %v1100_v5  ;;  %v4859_v61 = vpop.f32.mrf.mxu1 }
 0x23a   : > { %v1310_v2 = vpack.c.bf16 %v1222_v33, %v1218_v10  ;;  %v1224_v10 = vmul.f32 %v1096_v56, %v1096_v56  ;;  %v1225_v33 = vmul.f32 %v1097_v17, %v1097_v17  ;;  %v1104_v17 = vmax.f32 %v4728_v31, 0.0 }
 0x23c   : > { %v1312_v15 = vpack.c.bf16 %v1228_v55, %v1224_v10  ;;  %v1110_v10 = vmax.f32 %v4754_v27, 0.0 }
 0x240   : > { %v4836_v8 = vpop.f32.mrf.mxu0  ;;  %v4857_v34 = vpop.f32.mrf.mxu3 }
 0x241   : > { %v4861_v3 = vpop.f32.mrf.mxu2  ;;  %v4873_v55 = vpop.f32.mrf.mxu1 }
 0x243   : > { %2167 = vmatmul.bf16.gmra.mxu0 %v3598_v60  ;;  %v1101_v60 = vmax.f32 %v4716_v38, 0.0 }
 0x247   : > { %1733 = vmatmul.bf16.gmra.mxu1 %v1308_v0  ;;  %v1226_v0 = vmul.f32 %v1098_v39, %v1098_v39  ;;  %v1108_v39 = vmax.f32 %v4741_v16, 0.0 }
 0x248   : > { %1822 = vmatmul.bf16.gmra.mxu2 %v1309_v43  ;;  %1911 = vmatmul.bf16.gmra.mxu3 %v1310_v2  ;;  %v4842_v4 = vpop.f32.mrf.mxu0  ;;  %v1229_v43 = vmul.f32 %v1101_v60, %v1101_v60  ;;  %v1230_v2 = vmul.f32 %v1102_v25, %v1102_v25  ;;  %v4865_v5 = vpop.f32.mrf.mxu3  ;;  %v1105_v60 = vmax.f32 %v4732_v35, 0.0  ;;  %v1106_v25 = vmax.f32 %v4737_v30, 0.0 }
 0x24a   : > { %v1313_v38 = vpack.c.bf16 %v1229_v43, %v1225_v33  ;;  %v1314_v19 = vpack.c.bf16 %v1230_v2, %v1226_v0  ;;  %v3600_v33 = vld [vmem:[%s4283_s28 + $0x30] sm:$0xff]  ;;  %v4876_v0 = vpop.f32.mrf.mxu2  ;;  %v1232_v2 = vmul.f32 %v1104_v17, %v1104_v17  ;;  %v1233_v31 = vmul.f32 %v1105_v60, %v1105_v60 }
 0x24b   : > { %v1116_v60 = vmax.f32 %v4770_v42, 0.0 }
 0x250   : > { %v4855_v53 = vpop.f32.mrf.mxu0  ;;  %v4880_v30 = vpop.f32.mrf.mxu3 }
 0x251   : > { %5289 = vst [vmem:[#allocation26_spill] sm:$0xff] %v4855_v53 }
 0x252   : > { %v4886_v17 = vpop.f32.mrf.mxu2 }
 0x253   : > { %2172 = vmatmul.bf16.gmra.mxu0 %v3599_v50  ;;  %v1109_v50 = vmax.f32 %v4743_v14, 0.0 }
 0x255   : > { %v1237_v16 = vmul.f32 %v1109_v50, %v1109_v50  ;;  %v1114_v50 = vmax.f32 %v4762_v9, 0.0 }
 0x257   : > { %1738 = vmatmul.bf16.gmra.mxu1 %v1312_v15  ;;  %v1236_v15 = vmul.f32 %v1108_v39, %v1108_v39  ;;  %v1317_v14 = vpack.c.bf16 %v1237_v16, %v1233_v31  ;;  %v1112_v39 = vmax.f32 %v4756_v13, 0.0  ;;  %v1244_v16 = vmul.f32 %v1116_v60, %v1116_v60 }
 0x258   : > { %1827 = vmatmul.bf16.gmra.mxu2 %v1313_v38  ;;  %1916 = vmatmul.bf16.gmra.mxu3 %v1314_v19  ;;  %v4863_v56 = vpop.f32.mrf.mxu0  ;;  %v1234_v38 = vmul.f32 %v1106_v25, %v1106_v25  ;;  %v1238_v19 = vmul.f32 %v1110_v10, %v1110_v10  ;;  %v1113_v25 = vmax.f32 %v4758_v49, 0.0  ;;  %v1117_v10 = vmax.f32 %v4773_v28, 0.0 }
 0x259   : > { %5290 = vst [vmem:[#allocation27_spill] sm:$0xff] %v4863_v56  ;;  %v1316_v35 = vpack.c.bf16 %v1236_v15, %v1232_v2  ;;  %v4882_v56 = vpop.f32.mrf.mxu1  ;;  %v3601_v2 = vld [vmem:[%s4283_s28 + $0x38] sm:$0xff]  ;;  %v4895_v15 = vpop.f32.mrf.mxu3 }
 0x25a   : > { %v1318_v27 = vpack.c.bf16 %v1238_v19, %v1234_v38  ;;  %v1240_v38 = vmul.f32 %v1112_v39, %v1112_v39  ;;  %v1241_v19 = vmul.f32 %v1113_v25, %v1113_v25  ;;  %v1245_v13 = vmul.f32 %v1117_v10, %v1117_v10  ;;  %v4901_v49 = vpop.f32.mrf.mxu2 }
 0x25b   : > { %v1120_v25 = vmax.f32 %v4779_v1, 0.0  ;;  %v1121_v10 = vmax.f32 %v4783_v24, 0.0 }
 0x25c   : > { %v1320_v9 = vpack.c.bf16 %v1244_v16, %v1240_v38  ;;  %v1321_v28 = vpack.c.bf16 %v1245_v13, %v1241_v19  ;;  %v1126_v38 = vmax.f32 %v4802_v11, 0.0  ;;  %v3602_v19 = vld [vmem:[%s4283_s28 + $0x40] sm:$0xff] }
 0x25d   : > { %v1248_v13 = vmul.f32 %v1120_v25, %v1120_v25 }
 0x260   : > { %v4878_v43 = vpop.f32.mrf.mxu0 }
 0x261   : > { %v4899_v42 = vpop.f32.mrf.mxu1  ;;  %v4905_v39 = vpop.f32.mrf.mxu3 }
 0x262   : > { %v4915_v16 = vpop.f32.mrf.mxu2 }
 0x263   : > { %2177 = vmatmul.bf16.gmra.mxu0 %v3600_v33  ;;  %v1118_v33 = vmax.f32 %v4777_v54, 0.0 }
 0x267   : > { %1743 = vmatmul.bf16.gmra.mxu1 %v1316_v35  ;;  %v1242_v35 = vmul.f32 %v1114_v50, %v1114_v50  ;;  %v1124_v50 = vmax.f32 %v4796_v51, 0.0 }
 0x268   : > { %1832 = vmatmul.bf16.gmra.mxu2 %v1317_v14  ;;  %1921 = vmatmul.bf16.gmra.mxu3 %v1318_v27  ;;  %v4884_v53 = vpop.f32.mrf.mxu0  ;;  %v1246_v14 = vmul.f32 %v1118_v33, %v1118_v33  ;;  %v1122_v33 = vmax.f32 %v4792_v45, 0.0 }
 0x269   : > { %5291 = vst [vmem:[#allocation30_spill] sm:$0xff] %v4884_v53  ;;  %v4907_v60 = vpop.f32.mrf.mxu1  ;;  %v4918_v24 = vpop.f32.mrf.mxu3 }
 0x26a   : > { %v1322_v54 = vpack.c.bf16 %v1246_v14, %v1242_v35  ;;  %v1252_v14 = vmul.f32 %v1124_v50, %v1124_v50 }
 0x26c   : > { %v1324_v45 = vpack.c.bf16 %v1252_v14, %v1248_v13  ;;  %v1134_v13 = vmax.f32 %v4831_v41, 0.0 }
 0x270   : > { %v4897_v31 = vpop.f32.mrf.mxu0 }
 0x271   : > { %5292 = vst [vmem:[#allocation31_spill] sm:$0xff] %v4897_v31  ;;  %v4920_v51 = vpop.f32.mrf.mxu1  ;;  %v4922_v31 = vpop.f32.mrf.mxu2 }
 0x272   : > { %v4930_v14 = vpop.f32.mrf.mxu3 }
 0x273   : > { %2182 = vmatmul.bf16.gmra.mxu0 %v3601_v2  ;;  %v1125_v2 = vmax.f32 %v4798_v57, 0.0 }
 0x275   : > { %v1253_v1 = vmul.f32 %v1125_v2, %v1125_v2  ;;  %v1128_v2 = vmax.f32 %v4804_v63, 0.0 }
 0x277   : > { %1748 = vmatmul.bf16.gmra.mxu1 %v1320_v9 }
 0x278   : > { %1837 = vmatmul.bf16.gmra.mxu2 %v1321_v28  ;;  %1926 = vmatmul.bf16.gmra.mxu3 %v1322_v54  ;;  %v4903_v27 = vpop.f32.mrf.mxu0  ;;  %v1249_v28 = vmul.f32 %v1121_v10, %v1121_v10  ;;  %v1250_v54 = vmul.f32 %v1122_v33, %v1122_v33 }
 0x279   : > { %5293 = vst [vmem:[#allocation32_spill] sm:$0xff] %v4903_v27  ;;  %v1254_v27 = vmul.f32 %v1126_v38, %v1126_v38  ;;  %v1129_v38 = vmax.f32 %v4812_v6, 0.0 }
 0x27a   : > { %v1325_v57 = vpack.c.bf16 %v1253_v1, %v1249_v28  ;;  %v4933_v28 = vpop.f32.mrf.mxu1 }
 0x27b   : > { %v1326_v11 = vpack.c.bf16 %v1254_v27, %v1250_v54  ;;  %v1130_v27 = vmax.f32 %v4817_v21, 0.0  ;;  %v4935_v21 = vpop.f32.mrf.mxu2 }
 0x280   : > { %v2148_v35 = vpop.f32.mrf.mxu0 }
 0x281   : > { %v3475_v9 = vmul.f32 -1.442695, %v2148_v35  ;;  %v1133_v35 = vmax.f32 %v4821_v12, 0.0 }
 0x283   : > { %3731 = vpow2.f32 %v3475_v9  ;;  %2187 = vmatmul.bf16.gmra.mxu0 %v3602_v19  ;;  %v1132_v19 = vmax.f32 %v4819_v20, 0.0  ;;  %v3603_v9 = vld [vmem:[%s4283_s28 + $0x48] sm:$0xff]  ;;  %v1261_v20 = vmul.f32 %v1133_v35, %v1133_v35 }
 0x285   : > { %v1260_v63 = vmul.f32 %v1132_v19, %v1132_v19 }
 0x287   : > { %1753 = vmatmul.bf16.gmra.mxu1 %v1324_v45  ;;  %v1256_v45 = vmul.f32 %v1128_v2, %v1128_v2 }
 0x288   : > { %1842 = vmatmul.bf16.gmra.mxu2 %v1325_v57  ;;  %1931 = vmatmul.bf16.gmra.mxu3 %v1326_v11  ;;  %v2150_v25 = vpop.f32.mrf.mxu0  ;;  %v1257_v57 = vmul.f32 %v1129_v38, %v1129_v38 }
 0x289   : > { %v3732_v50 = vpop.eup %3731  ;;  %v3476_v10 = vmul.f32 -1.442695, %v2150_v25  ;;  %v1258_v25 = vmul.f32 %v1130_v27, %v1130_v27  ;;  %v1328_v38 = vpack.c.bf16 %v1260_v63, %v1256_v45  ;;  %v1137_v45 = vmax.f32 %v4838_v40, 0.0 }
 0x28a   : > { %v2324_v33 = vadd.f32 1.0, %v3732_v50  ;;  %v1262_v50 = vmul.f32 %v1134_v13, %v1134_v13  ;;  %v1329_v35 = vpack.c.bf16 %v1261_v20, %v1257_v57  ;;  %v1138_v57 = vmax.f32 %v4840_v58, 0.0  ;;  %v4950_v20 = vpop.f32.mrf.mxu1 }
 0x28b   : > { %3733 = vpow2.f32 %v3476_v10  ;;  %v5294_v10 = vld [vmem:[#allocation17_spill] sm:$0xff] }
 0x28c   : > { %3735 = vrcp.f32 %v2324_v33  ;;  %v1690_v53 = vadd.f32 %v4859_v61, %v5294_v10  ;;  %v2367_v27 = vand.u32 2147483648, %v2324_v33  ;;  %v1330_v13 = vpack.c.bf16 %v1262_v50, %v1258_v25 }
 0x28d   : > { %vm2361_vm1 = vweird.f32 %v2324_v33 }
 0x28e   : > { %v1779_v19 = vadd.f32 %v4861_v3, %v1690_v53 }
 0x290   : > { %v2153_v54 = vpop.f32.mrf.mxu0  ;;  %v1868_v25 = vadd.f32 %v4865_v5, %v1779_v19  ;;  %v1141_v19 = vmax.f32 %v4846_v22, 0.0  ;;  %v1266_v22 = vmul.f32 %v1138_v57, %v1138_v57 }
 0x291   : > { %v3734_v1 = vpop.eup %3733  ;;  %v3477_v11 = vmul.f32 -1.442695, %v2153_v54 }
 0x292   : > { %v3736_v6 = vpop.eup %3735  ;;  %v4937_v12 = vadd.f32 1.0, %v3734_v1  ;;  %v2365_v1 = vand.u32 2147483647, %v2324_v33 }
 0x293   : > { %v2357_v41 = vmul.f32 %v3736_v6, %v2324_v33  ;;  %3737 = vpow2.f32 %v3477_v11  ;;  %2192 = vmatmul.bf16.gmra.mxu0 %v3603_v9  ;;  %vm2362_vm0 = vweird.f32 %v3736_v6  ;;  %v1136_v11 = vmax.f32 %v4834_v7, 0.0  ;;  %v4944_v9 = vpop.f32.mrf.mxu3 }
 0x294   : > { %3739 = vrcp.f32 %v4937_v12  ;;  %vm2363_vm2 = vmor %vm2361_vm1, %vm2362_vm0  ;;  %v2368_v7 = vor.u32 1.1754944e-38, %v2367_v27  ;;  %vm2366_vm3 = vcmp.eq.f32.partialorder %v2365_v1, 8.507059e+37  ;;  %v1140_v33 = vmax.f32 %v4844_v46, 0.0  ;;  %v3604_v1 = vld [vmem:[%s4283_s28 + $0x50] sm:$0xff] }
 0x295   : > { %v2358_v2 = vsub.f32 1.0, %v2357_v41  ;;  %vm2376_vm5 = vweird.f32 %v4937_v12 }
 0x297   : > { %v2359_v54 = vmul.f32 %v3736_v6, %v2358_v2  ;;  %1758 = vmatmul.bf16.gmra.mxu1 %v1328_v38  ;;  %v5295_v2 = vld [vmem:[#allocation18_spill] sm:$0xff]  ;;  %v4959_v38 = vpop.f32.mrf.mxu2 }
 0x298   : > { %1847 = vmatmul.bf16.gmra.mxu2 %v1329_v35  ;;  %1936 = vmatmul.bf16.gmra.mxu3 %v1330_v13  ;;  %v2155_v61 = vpop.f32.mrf.mxu0  ;;  %v1692_v58 = vadd.f32 %v4873_v55, %v5295_v2  ;;  %v2380_v55 = vand.u32 2147483647, %v4937_v12 }
 0x299   : > { %v3738_v10 = vpop.eup %3737  ;;  %v2360_v63 = vadd.f32 %v3736_v6, %v2359_v54  ;;  %v3478_v53 = vmul.f32 -1.442695, %v2155_v61  ;;  %v2382_v54 = vand.u32 2147483648, %v4937_v12  ;;  %v1264_v61 = vmul.f32 %v1136_v11, %v1136_v11 }
 0x29a   : > { %v3740_v3 = vpop.eup %3739  ;;  %v4953_v50 = vadd.f32 1.0, %v3738_v10  ;;  %v1781_v13 = vadd.f32 %v4876_v0, %v1692_v58  ;;  %v1265_v10 = vmul.f32 %v1137_v45, %v1137_v45  ;;  %vm2381_vm7 = vcmp.eq.f32.partialorder %v2380_v55, 8.507059e+37 }
 0x29b   : > { %v2364_v41 = vsel %vm2363_vm2, %v3736_v6, %v2360_v63  ;;  %v2372_v40 = vmul.f32 %v3740_v3, %v4937_v12  ;;  %3741 = vpow2.f32 %v3478_v53  ;;  %v1142_v6 = vmax.f32 %v4857_v34, 0.0  ;;  %v4973_v58 = vpop.f32.mrf.mxu3  ;;  %v5296_v12 = vld [vmem:[#allocation19_spill] sm:$0xff] }
 0x29c   : > { %v2369_v5 = vsel %vm2366_vm3, %v2368_v7, %v2364_v41  ;;  %3743 = vrcp.f32 %v4953_v50  ;;  %vm2377_vm4 = vweird.f32 %v3740_v3  ;;  %v1268_v63 = vmul.f32 %v1140_v33, %v1140_v33 }
 0x29d   : > { %v2836_v27 = vmul.f32 %v2369_v5, %v1868_v25  ;;  %v2373_v35 = vsub.f32 1.0, %v2372_v40  ;;  %v1269_v34 = vmul.f32 %v1141_v19, %v1141_v19  ;;  %v1270_v40 = vmul.f32 %v1142_v6, %v1142_v6  ;;  %vm2378_vm6 = vmor %vm2376_vm5, %vm2377_vm4  ;;  %v4981_v19 = vpop.f32.mrf.mxu1 }
 0x29e   : > { %v1870_v2 = vadd.f32 %v4880_v30, %v1781_v13  ;;  %v2383_v5 = vor.u32 1.1754944e-38, %v2382_v54  ;;  %v1695_v33 = vadd.f32 %v4882_v56, %v5296_v12  ;;  %v1332_v6 = vpack.c.bf16 %v1268_v63, %v1264_v61 }
 0x29f   : > { %2868 = vst [vmem:[%s4966_s13] sm:$0xff] %v2836_v27  ;;  %v2374_v46 = vmul.f32 %v3740_v3, %v2373_v35  ;;  %v2397_v54 = vand.u32 2147483648, %v4953_v50  ;;  %v1334_v55 = vpack.c.bf16 %v1270_v40, %v1266_v22  ;;  %v2395_v56 = vand.u32 2147483647, %v4953_v50  ;;  %v5297_v40 = vld [vmem:[#allocation20_spill] sm:$0xff] }
 0x2a0   : > { %v2158_v53 = vpop.f32.mrf.mxu0  ;;  %v1784_v13 = vadd.f32 %v4886_v17, %v1695_v33  ;;  %vm2391_vm9 = vweird.f32 %v4953_v50 }
 0x2a1   : > { %v3742_v25 = vpop.eup %3741  ;;  %v2375_v7 = vadd.f32 %v3740_v3, %v2374_v46  ;;  %v3479_v0 = vmul.f32 -1.442695, %v2158_v53  ;;  %v1333_v46 = vpack.c.bf16 %v1269_v34, %v1265_v10  ;;  %v2398_v10 = vor.u32 1.1754944e-38, %v2397_v54 }
 0x2a2   : > { %v3744_v41 = vpop.eup %3743  ;;  %v4976_v11 = vadd.f32 1.0, %v3742_v25  ;;  %v1873_v63 = vadd.f32 %v4895_v15, %v1784_v13  ;;  %vm2396_vm11 = vcmp.eq.f32.partialorder %v2395_v56, 8.507059e+37 }
 0x2a3   : > { %v2379_v45 = vsel %vm2378_vm6, %v3740_v3, %v2375_v7  ;;  %v2387_v57 = vmul.f32 %v3744_v41, %v4953_v50  ;;  %3745 = vpow2.f32 %v3479_v0  ;;  %2197 = vmatmul.bf16.gmra.mxu0 %v3604_v1  ;;  %v4985_v3 = vpop.f32.mrf.mxu2  ;;  %vm2392_vm8 = vweird.f32 %v3744_v41 }
 0x2a4   : > { %v2384_v30 = vsel %vm2381_vm7, %v2383_v5, %v2379_v45  ;;  %3747 = vrcp.f32 %v4976_v11  ;;  %vm2393_vm10 = vmor %vm2391_vm9, %vm2392_vm8  ;;  %v4995_v5 = vpop.f32.mrf.mxu3  ;;  %vm2406_vm13 = vweird.f32 %v4976_v11 }
 0x2a5   : > { %v2837_v27 = vmul.f32 %v2384_v30, %v1870_v2  ;;  %v2388_v35 = vsub.f32 1.0, %v2387_v57  ;;  %v1697_v2 = vadd.f32 %v4899_v42, %v5297_v40  ;;  %v4998_v12 = vpop.f32.mrf.mxu1  ;;  %v2410_v30 = vand.u32 2147483647, %v4976_v11 }
 0x2a7   : > { %2869 = vst [vmem:[%s4966_s13 + $0x8] sm:$0xff] %v2837_v27  ;;  %v2389_v1 = vmul.f32 %v3744_v41, %v2388_v35  ;;  %1763 = vmatmul.bf16.gmra.mxu1 %v1332_v6  ;;  %v1786_v15 = vadd.f32 %v4901_v49, %v1697_v2  ;;  %v3605_v27 = vld [vmem:[%s4283_s28 + $0x58] sm:$0xff]  ;;  %vm2411_vm15 = vcmp.eq.f32.partialorder %v2410_v30, 8.507059e+37 }
 0x2a8   : > { %1852 = vmatmul.bf16.gmra.mxu2 %v1333_v46  ;;  %1941 = vmatmul.bf16.gmra.mxu3 %v1334_v55  ;;  %v2160_v53 = vpop.f32.mrf.mxu0 }
 0x2a9   : > { %v3746_v25 = vpop.eup %3745  ;;  %v2390_v7 = vadd.f32 %v3744_v41, %v2389_v1  ;;  %v3480_v17 = vmul.f32 -1.442695, %v2160_v53  ;;  %v1875_v49 = vadd.f32 %v4905_v39, %v1786_v15 }
 0x2aa   : > { %v3748_v61 = vpop.eup %3747  ;;  %v2328_v22 = vadd.f32 1.0, %v3746_v25  ;;  %v5298_v25 = vld [vmem:[#allocation21_spill] sm:$0xff] }
 0x2ab   : > { %v2394_v34 = vsel %vm2393_vm10, %v3744_v41, %v2390_v7  ;;  %v2402_v0 = vmul.f32 %v3748_v61, %v4976_v11  ;;  %3749 = vpow2.f32 %v3480_v17  ;;  %v2412_v41 = vand.u32 2147483648, %v4976_v11  ;;  %v5004_v35 = vpop.f32.mrf.mxu2 }
 0x2ac   : > { %v2399_v50 = vsel %vm2396_vm11, %v2398_v10, %v2394_v34  ;;  %3751 = vrcp.f32 %v2328_v22  ;;  %vm2407_vm12 = vweird.f32 %v3748_v61  ;;  %v1700_v7 = vadd.f32 %v4907_v60, %v5298_v25  ;;  %v5011_v34 = vpop.f32.mrf.mxu3 }
 0x2ad   : > { %v2838_v45 = vmul.f32 %v2399_v50, %v1873_v63  ;;  %v2403_v57 = vsub.f32 1.0, %v2402_v0  ;;  %vm2408_vm14 = vmor %vm2406_vm13, %vm2407_vm12  ;;  %v2413_v55 = vor.u32 1.1754944e-38, %v2412_v41  ;;  %v2427_v39 = vand.u32 2147483648, %v2328_v22  ;;  %v5014_v40 = vpop.f32.mrf.mxu1 }
 0x2ae   : > { %v1789_v10 = vadd.f32 %v4915_v16, %v1700_v7  ;;  %vm2421_vm1 = vweird.f32 %v2328_v22 }
 0x2af   : > { %2870 = vst [vmem:[%s4966_s13 + $0x10] sm:$0xff] %v2838_v45  ;;  %v2404_v33 = vmul.f32 %v3748_v61, %v2403_v57  ;;  %v2428_v16 = vor.u32 1.1754944e-38, %v2427_v39 }
 0x2b0   : > { %v2163_v42 = vpop.f32.mrf.mxu0  ;;  %v1878_v15 = vadd.f32 %v4918_v24, %v1789_v10 }
 0x2b1   : > { %v3750_v6 = vpop.eup %3749  ;;  %v2405_v13 = vadd.f32 %v3748_v61, %v2404_v33  ;;  %v3481_v54 = vmul.f32 -1.442695, %v2163_v42  ;;  %v5299_v42 = vld [vmem:[#allocation25_spill] sm:$0xff] }
 0x2b2   : > { %v3752_v46 = vpop.eup %3751  ;;  %v2329_v1 = vadd.f32 1.0, %v3750_v6  ;;  %v1702_v6 = vadd.f32 %v4920_v51, %v5299_v42 }
 0x2b3   : > { %v2409_v56 = vsel %vm2408_vm14, %v3748_v61, %v2405_v13  ;;  %v2417_v53 = vmul.f32 %v3752_v46, %v2328_v22  ;;  %3753 = vpow2.f32 %v3481_v54  ;;  %2202 = vmatmul.bf16.gmra.mxu0 %v3605_v27  ;;  %vm2422_vm0 = vweird.f32 %v3752_v46  ;;  %v5017_v41 = vpop.f32.mrf.mxu2 }
 0x2b4   : > { %v2414_v17 = vsel %vm2411_vm15, %v2413_v55, %v2409_v56  ;;  %3755 = vrcp.f32 %v2329_v1  ;;  %v2425_v61 = vand.u32 2147483647, %v2328_v22  ;;  %vm2423_vm2 = vmor %vm2421_vm1, %vm2422_vm0  ;;  %v1791_v24 = vadd.f32 %v4922_v31, %v1702_v6  ;;  %v5024_v25 = vpop.f32.mrf.mxu3 }
 0x2b5   : > { %v2839_v63 = vmul.f32 %v2414_v17, %v1875_v49  ;;  %v2418_v11 = vsub.f32 1.0, %v2417_v53  ;;  %v2442_v49 = vand.u32 2147483648, %v2329_v1  ;;  %v2440_v56 = vand.u32 2147483647, %v2329_v1  ;;  %v3606_v53 = vld [vmem:[%s4283_s28 + $0x60] sm:$0xff]  ;;  %v5027_v10 = vpop.f32.mrf.mxu1 }
 0x2b6   : > { %vm2426_vm3 = vcmp.eq.f32.partialorder %v2425_v61, 8.507059e+37  ;;  %vm2436_vm5 = vweird.f32 %v2329_v1 }
 0x2b7   : > { %2871 = vst [vmem:[%s4966_s13 + $0x18] sm:$0xff] %v2839_v63  ;;  %v2419_v0 = vmul.f32 %v3752_v46, %v2418_v11  ;;  %v1880_v11 = vadd.f32 %v4930_v14, %v1791_v24  ;;  %v2443_v31 = vor.u32 1.1754944e-38, %v2442_v49  ;;  %vm2441_vm7 = vcmp.eq.f32.partialorder %v2440_v56, 8.507059e+37 }
 0x2b8   : > { %v2165_v2 = vpop.f32.mrf.mxu0  ;;  %v1707_v49 = vadd.f32 %v4950_v20, %v4647_v37 }
 0x2b9   : > { %v3754_v50 = vpop.eup %3753  ;;  %v2420_v45 = vadd.f32 %v3752_v46, %v2419_v0  ;;  %v3482_v60 = vmul.f32 -1.442695, %v2165_v2  ;;  %v1705_v2 = vadd.f32 %v4933_v28, %v4636_v59 }
 0x2ba   : > { %v3756_v57 = vpop.eup %3755  ;;  %v2330_v33 = vadd.f32 1.0, %v3754_v50 }
 0x2bb   : > { %v2424_v30 = vsel %vm2423_vm2, %v3752_v46, %v2420_v45  ;;  %v2432_v27 = vmul.f32 %v3756_v57, %v2329_v1  ;;  %3757 = vpow2.f32 %v3482_v60  ;;  %vm2437_vm4 = vweird.f32 %v3756_v57  ;;  %v5031_v50 = vpop.f32.mrf.mxu2 }
 0x2bc   : > { %v2429_v13 = vsel %vm2426_vm3, %v2428_v16, %v2424_v30  ;;  %3759 = vrcp.f32 %v2330_v33  ;;  %vm2438_vm6 = vmor %vm2436_vm5, %vm2437_vm4  ;;  %v1794_v60 = vadd.f32 %v4935_v21, %v1705_v2  ;;  %vm2451_vm9 = vweird.f32 %v2330_v33  ;;  %v5036_v28 = vpop.f32.mrf.mxu3 }
 0x2bd   : > { %v2840_v22 = vmul.f32 %v2429_v13, %v1878_v15  ;;  %v2433_v54 = vsub.f32 1.0, %v2432_v27  ;;  %v2457_v15 = vand.u32 2147483648, %v2330_v33 }
 0x2be   : > { %v1883_v59 = vadd.f32 %v4944_v9, %v1794_v60 }
 0x2bf   : > { %2872 = vst [vmem:[%s4966_s13 + $0x20] sm:$0xff] %v2840_v22  ;;  %v2434_v55 = vmul.f32 %v3756_v57, %v2433_v54  ;;  %v2458_v22 = vor.u32 1.1754944e-38, %v2457_v15 }
 0x2c0   : > { %v2168_v46 = vpop.f32.mrf.mxu0 }
 0x2c1   : > { %v3758_v7 = vpop.eup %3757  ;;  %v2435_v17 = vadd.f32 %v3756_v57, %v2434_v55  ;;  %v3483_v63 = vmul.f32 -1.442695, %v2168_v46  ;;  %v5040_v55 = vpop.f32.mrf.mxu1 }
 0x2c2   : > { %v3760_v51 = vpop.eup %3759  ;;  %v2331_v39 = vadd.f32 1.0, %v3758_v7 }
 0x2c3   : > { %v2439_v0 = vsel %vm2438_vm6, %v3756_v57, %v2435_v17  ;;  %v2447_v61 = vmul.f32 %v3760_v51, %v2330_v33  ;;  %3761 = vpow2.f32 %v3483_v63  ;;  %2207 = vmatmul.bf16.gmra.mxu0 %v3606_v53  ;;  %vm2452_vm8 = vweird.f32 %v3760_v51  ;;  %v5043_v46 = vpop.f32.mrf.mxu2 }
 0x2c4   : > { %v2444_v1 = vsel %vm2441_vm7, %v2443_v31, %v2439_v0  ;;  %3763 = vrcp.f32 %v2331_v39  ;;  %v2455_v57 = vand.u32 2147483647, %v2330_v33  ;;  %vm2453_vm10 = vmor %vm2451_vm9, %vm2452_vm8  ;;  %v1796_v53 = vadd.f32 %v4959_v38, %v1707_v49  ;;  %v5050_v15 = vpop.f32.mrf.mxu3 }
 0x2c5   : > { %v2841_v45 = vmul.f32 %v2444_v1, %v1880_v11  ;;  %v2448_v14 = vsub.f32 1.0, %v2447_v61  ;;  %v2472_v7 = vand.u32 2147483648, %v2331_v39  ;;  %v2470_v63 = vand.u32 2147483647, %v2331_v39 }
 0x2c6   : > { %vm2456_vm11 = vcmp.eq.f32.partialorder %v2455_v57, 8.507059e+37  ;;  %vm2466_vm13 = vweird.f32 %v2331_v39  ;;  %v1885_v61 = vadd.f32 %v4973_v58, %v1796_v53  ;;  %v1712_v53 = vadd.f32 %v4998_v12, %v4672_v48 }
 0x2c7   : > { %2873 = vst [vmem:[%s4966_s13 + $0x28] sm:$0xff] %v2841_v45  ;;  %v2449_v16 = vmul.f32 %v3760_v51, %v2448_v14  ;;  %v2473_v2 = vor.u32 1.1754944e-38, %v2472_v7  ;;  %vm2471_vm15 = vcmp.eq.f32.partialorder %v2470_v63, 8.507059e+37  ;;  %v5300_v14 = vld [vmem:[#allocation29_spill] sm:$0xff] }
 0x2c8   : > { %v2170_v30 = vpop.f32.mrf.mxu0  ;;  %v1710_v60 = vadd.f32 %v4981_v19, %v5300_v14  ;;  %v1801_v63 = vadd.f32 %v5004_v35, %v1712_v53  ;;  %v1717_v53 = vadd.f32 %v5027_v10, %v4693_v62 }
 0x2c9   : > { %v3762_v27 = vpop.eup %3761  ;;  %v2450_v42 = vadd.f32 %v3760_v51, %v2449_v16  ;;  %v3484_v6 = vmul.f32 -1.442695, %v2170_v30  ;;  %v5053_v30 = vpop.f32.mrf.mxu1 }
 0x2ca   : > { %v3764_v13 = vpop.eup %3763  ;;  %v2332_v54 = vadd.f32 1.0, %v3762_v27  ;;  %v1799_v58 = vadd.f32 %v4985_v3, %v1710_v60 }
 0x2cb   : > { %v2454_v21 = vsel %vm2453_vm10, %v3760_v51, %v2450_v42  ;;  %v2462_v24 = vmul.f32 %v3764_v13, %v2331_v39  ;;  %3765 = vpow2.f32 %v3484_v6  ;;  %vm2467_vm12 = vweird.f32 %v3764_v13  ;;  %v3607_v51 = vld [vmem:[%s4283_s28 + $0x68] sm:$0xff] }
 0x2cc   : > { %v2459_v33 = vsel %vm2456_vm11, %v2458_v22, %v2454_v21  ;;  %3767 = vrcp.f32 %v2332_v54  ;;  %vm2468_vm14 = vmor %vm2466_vm13, %vm2467_vm12  ;;  %v2487_v27 = vand.u32 2147483648, %v2332_v54  ;;  %v2485_v6 = vand.u32 2147483647, %v2332_v54 }
 0x2cd   : > { %v2842_v56 = vmul.f32 %v2459_v33, %v1883_v59  ;;  %v2463_v9 = vsub.f32 1.0, %v2462_v24  ;;  %vm2481_vm1 = vweird.f32 %v2332_v54  ;;  %v1888_v49 = vadd.f32 %v4995_v5, %v1799_v58 }
 0x2ce   : > { %v2488_v3 = vor.u32 1.1754944e-38, %v2487_v27  ;;  %vm2486_vm3 = vcmp.eq.f32.partialorder %v2485_v6, 8.507059e+37 }
 0x2cf   : > { %2874 = vst [vmem:[%s4966_s13 + $0x30] sm:$0xff] %v2842_v56  ;;  %v2464_v17 = vmul.f32 %v3764_v13, %v2463_v9 }
 0x2d0   : > { %v2173_v11 = vpop.f32.mrf.mxu0 }
 0x2d1   : > { %v3766_v31 = vpop.eup %3765  ;;  %v2465_v0 = vadd.f32 %v3764_v13, %v2464_v17  ;;  %v3485_v37 = vmul.f32 -1.442695, %v2173_v11 }
 0x2d2   : > { %v3768_v20 = vpop.eup %3767  ;;  %v2333_v38 = vadd.f32 1.0, %v3766_v31 }
 0x2d3   : > { %v2469_v1 = vsel %vm2468_vm14, %v3764_v13, %v2465_v0  ;;  %v2477_v45 = vmul.f32 %v3768_v20, %v2332_v54  ;;  %3769 = vpow2.f32 %v3485_v37  ;;  %2212 = vmatmul.bf16.gmra.mxu0 %v3607_v51  ;;  %vm2482_vm0 = vweird.f32 %v3768_v20  ;;  %v5056_v13 = vpop.f32.mrf.mxu2  ;;  %v5062_v51 = vpop.f32.mrf.mxu3  ;;  %v3608_v0 = vld [vmem:[%s4283_s28 + $0x70] sm:$0xff] }
 0x2d4   : > { %v2474_v16 = vsel %vm2471_vm15, %v2473_v2, %v2469_v1  ;;  %3771 = vrcp.f32 %v2333_v38  ;;  %vm2483_vm2 = vmor %vm2481_vm1, %vm2482_vm0  ;;  %v2502_v5 = vand.u32 2147483648, %v2333_v38  ;;  %v2500_v31 = vand.u32 2147483647, %v2333_v38  ;;  %v5066_v37 = vpop.f32.mrf.mxu1 }
 0x2d5   : > { %v2843_v39 = vmul.f32 %v2474_v16, %v1885_v61  ;;  %v2478_v57 = vsub.f32 1.0, %v2477_v45  ;;  %vm2496_vm5 = vweird.f32 %v2333_v38  ;;  %v1890_v1 = vadd.f32 %v5011_v34, %v1801_v63 }
 0x2d6   : > { %v2503_v35 = vor.u32 1.1754944e-38, %v2502_v5  ;;  %vm2501_vm7 = vcmp.eq.f32.partialorder %v2500_v31, 8.507059e+37  ;;  %v3609_v31 = vld [vmem:[%s4283_s28 + $0x78] sm:$0xff] }
 0x2d7   : > { %2875 = vst [vmem:[%s4966_s13 + $0x38] sm:$0xff] %v2843_v39  ;;  %v2479_v42 = vmul.f32 %v3768_v20, %v2478_v57  ;;  %v1715_v39 = vadd.f32 %v5014_v40, %v4684_v52 }
 0x2d8   : > { %v2175_v59 = vpop.f32.mrf.mxu0 }
 0x2d9   : > { %v3770_v22 = vpop.eup %3769  ;;  %v2480_v19 = vadd.f32 %v3768_v20, %v2479_v42  ;;  %v3486_v21 = vmul.f32 -1.442695, %v2175_v59  ;;  %v1804_v34 = vadd.f32 %v5017_v41, %v1715_v39 }
 0x2da   : > { %v3772_v24 = vpop.eup %3771  ;;  %v2334_v33 = vadd.f32 1.0, %v3770_v22 }
 0x2db   : > { %v2484_v56 = vsel %vm2483_vm2, %v3768_v20, %v2480_v19  ;;  %v2492_v9 = vmul.f32 %v3772_v24, %v2333_v38  ;;  %3773 = vpow2.f32 %v3486_v21  ;;  %vm2497_vm4 = vweird.f32 %v3772_v24  ;;  %v5069_v45 = vpop.f32.mrf.mxu2  ;;  %v5075_v59 = vpop.f32.mrf.mxu3 }
 0x2dc   : > { %v2489_v7 = vsel %vm2486_vm3, %v2488_v3, %v2484_v56  ;;  %3775 = vrcp.f32 %v2334_v33  ;;  %vm2498_vm6 = vmor %vm2496_vm5, %vm2497_vm4  ;;  %v2517_v27 = vand.u32 2147483648, %v2334_v33  ;;  %v2515_v6 = vand.u32 2147483647, %v2334_v33  ;;  %v5078_v40 = vpop.f32.mrf.mxu1 }
 0x2dd   : > { %v2844_v17 = vmul.f32 %v2489_v7, %v1888_v49  ;;  %v2493_v54 = vsub.f32 1.0, %v2492_v9  ;;  %vm2511_vm9 = vweird.f32 %v2334_v33  ;;  %v1893_v52 = vadd.f32 %v5024_v25, %v1804_v34 }
 0x2de   : > { %v2518_v41 = vor.u32 1.1754944e-38, %v2517_v27  ;;  %vm2516_vm11 = vcmp.eq.f32.partialorder %v2515_v6, 8.507059e+37 }
 0x2df   : > { %2876 = vst [vmem:[%s4966_s13 + $0x40] sm:$0xff] %v2844_v17  ;;  %v2494_v11 = vmul.f32 %v3772_v24, %v2493_v54  ;;  %v1806_v54 = vadd.f32 %v5031_v50, %v1717_v53 }
 0x2e0   : > { %v2178_v20 = vpop.f32.mrf.mxu0 }
 0x2e1   : > { %v3774_v61 = vpop.eup %3773  ;;  %v2495_v2 = vadd.f32 %v3772_v24, %v2494_v11  ;;  %v3487_v48 = vmul.f32 -1.442695, %v2178_v20  ;;  %v1895_v10 = vadd.f32 %v5036_v28, %v1806_v54 }
 0x2e2   : > { %v3776_v12 = vpop.eup %3775  ;;  %v2335_v14 = vadd.f32 1.0, %v3774_v61 }
 0x2e3   : > { %v2499_v60 = vsel %vm2498_vm6, %v3772_v24, %v2495_v2  ;;  %v2507_v16 = vmul.f32 %v3776_v12, %v2334_v33  ;;  %3777 = vpow2.f32 %v3487_v48  ;;  %2217 = vmatmul.bf16.gmra.mxu0 %v3608_v0  ;;  %vm2512_vm8 = vweird.f32 %v3776_v12  ;;  %v5082_v7 = vpop.f32.mrf.mxu2  ;;  %v5088_v48 = vpop.f32.mrf.mxu3 }
 0x2e4   : > { %v2504_v57 = vsel %vm2501_vm7, %v2503_v35, %v2499_v60  ;;  %3779 = vrcp.f32 %v2335_v14  ;;  %vm2513_vm10 = vmor %vm2511_vm9, %vm2512_vm8  ;;  %v2532_v63 = vand.u32 2147483648, %v2335_v14  ;;  %v2530_v11 = vand.u32 2147483647, %v2335_v14 }
 0x2e5   : > { %v2845_v38 = vmul.f32 %v2504_v57, %v1890_v1  ;;  %v2508_v58 = vsub.f32 1.0, %v2507_v16  ;;  %vm2526_vm13 = vweird.f32 %v2335_v14  ;;  %v1720_v60 = vadd.f32 %v5040_v55, %v4707_v29  ;;  %v5092_v16 = vpop.f32.mrf.mxu1 }
 0x2e6   : > { %vm2531_vm15 = vcmp.eq.f32.partialorder %v2530_v11, 8.507059e+37 }
 0x2e7   : > { %2877 = vst [vmem:[%s4966_s13 + $0x48] sm:$0xff] %v2845_v38  ;;  %v2509_v42 = vmul.f32 %v3776_v12, %v2508_v58  ;;  %v1809_v57 = vadd.f32 %v5043_v46, %v1720_v60 }
 0x2e8   : > { %v2180_v22 = vpop.f32.mrf.mxu0 }
 0x2e9   : > { %v3778_v19 = vpop.eup %3777  ;;  %v2510_v21 = vadd.f32 %v3776_v12, %v2509_v42  ;;  %v3488_v24 = vmul.f32 -1.442695, %v2180_v22 }
 0x2ea   : > { %v3780_v49 = vpop.eup %3779  ;;  %v2336_v3 = vadd.f32 1.0, %v3778_v19  ;;  %v1898_v19 = vadd.f32 %v5050_v15, %v1809_v57 }
 0x2eb   : > { %v2514_v56 = vsel %vm2513_vm10, %v3776_v12, %v2510_v21  ;;  %v2522_v9 = vmul.f32 %v3780_v49, %v2335_v14  ;;  %3781 = vpow2.f32 %v3488_v24  ;;  %vm2527_vm12 = vweird.f32 %v3780_v49  ;;  %v5095_v38 = vpop.f32.mrf.mxu2 }
 0x2ec   : > { %v2519_v33 = vsel %vm2516_vm11, %v2518_v41, %v2514_v56  ;;  %3783 = vrcp.f32 %v2336_v3  ;;  %vm2528_vm14 = vmor %vm2526_vm13, %vm2527_vm12  ;;  %v2533_v12 = vor.u32 1.1754944e-38, %v2532_v63  ;;  %v2547_v58 = vand.u32 2147483648, %v2336_v3  ;;  %v5101_v41 = vpop.f32.mrf.mxu3 }
 0x2ed   : > { %v2846_v17 = vmul.f32 %v2519_v33, %v1893_v52  ;;  %v2523_v25 = vsub.f32 1.0, %v2522_v9  ;;  %v2545_v27 = vand.u32 2147483647, %v2336_v3  ;;  %vm2541_vm1 = vweird.f32 %v2336_v3  ;;  %v5104_v15 = vpop.f32.mrf.mxu1 }
 0x2ee   : > { %v2548_v21 = vor.u32 1.1754944e-38, %v2547_v58  ;;  %v1722_v52 = vadd.f32 %v5053_v30, %v4718_v32 }
 0x2ef   : > { %2878 = vst [vmem:[%s4966_s13 + $0x50] sm:$0xff] %v2846_v17  ;;  %v2524_v5 = vmul.f32 %v3780_v49, %v2523_v25  ;;  %vm2546_vm3 = vcmp.eq.f32.partialorder %v2545_v27, 8.507059e+37 }
 0x2f0   : > { %v2183_v0 = vpop.f32.mrf.mxu0  ;;  %v1811_v53 = vadd.f32 %v5056_v13, %v1722_v52 }
 0x2f1   : > { %v3782_v20 = vpop.eup %3781  ;;  %v2525_v61 = vadd.f32 %v3780_v49, %v2524_v5  ;;  %v3489_v2 = vmul.f32 -1.442695, %v2183_v0 }
 0x2f2   : > { %v3784_v62 = vpop.eup %3783  ;;  %v2337_v50 = vadd.f32 1.0, %v3782_v20 }
 0x2f3   : > { %v2529_v1 = vsel %vm2528_vm14, %v3780_v49, %v2525_v61  ;;  %v2537_v35 = vmul.f32 %v3784_v62, %v2336_v3  ;;  %3785 = vpow2.f32 %v3489_v2  ;;  %2222 = vmatmul.bf16.gmra.mxu0 %v3609_v31  ;;  %vm2542_vm0 = vweird.f32 %v3784_v62  ;;  %v5107_v54 = vpop.f32.mrf.mxu2 }
 0x2f4   : > { %v2534_v14 = vsel %vm2531_vm15, %v2533_v12, %v2529_v1  ;;  %3787 = vrcp.f32 %v2337_v50  ;;  %vm2543_vm2 = vmor %vm2541_vm1, %vm2542_vm0  ;;  %v2562_v33 = vand.u32 2147483648, %v2337_v50  ;;  %v2560_v25 = vand.u32 2147483647, %v2337_v50  ;;  %v5113_v1 = vpop.f32.mrf.mxu3 }
 0x2f5   : > { %v2847_v39 = vmul.f32 %v2534_v14, %v1895_v10  ;;  %v2538_v28 = vsub.f32 1.0, %v2537_v35  ;;  %vm2556_vm5 = vweird.f32 %v2337_v50  ;;  %v1900_v31 = vadd.f32 %v5062_v51, %v1811_v53  ;;  %v5116_v14 = vpop.f32.mrf.mxu1 }
 0x2f6   : > { %v2563_v13 = vor.u32 1.1754944e-38, %v2562_v33  ;;  %vm2561_vm7 = vcmp.eq.f32.partialorder %v2560_v25, 8.507059e+37  ;;  %v1725_v2 = vadd.f32 %v5066_v37, %v4730_v26 }
 0x2f7   : > { %2879 = vst [vmem:[%s4966_s13 + $0x58] sm:$0xff] %v2847_v39  ;;  %v2539_v34 = vmul.f32 %v3784_v62, %v2538_v28 }
 0x2f8   : > { %v2185_v42 = vpop.f32.mrf.mxu0 }
 0x2f9   : > { %v3786_v6 = vpop.eup %3785  ;;  %v2540_v22 = vadd.f32 %v3784_v62, %v2539_v34  ;;  %v3490_v29 = vmul.f32 -1.442695, %v2185_v42 }
 0x2fa   : > { %v3788_v55 = vpop.eup %3787  ;;  %v2338_v24 = vadd.f32 1.0, %v3786_v6 }
 0x2fb   : > { %v2544_v46 = vsel %vm2543_vm2, %v3784_v62, %v2540_v22  ;;  %v2552_v49 = vmul.f32 %v3788_v55, %v2337_v50  ;;  %3789 = vpow2.f32 %v3490_v29  ;;  %vm2557_vm4 = vweird.f32 %v3788_v55  ;;  %v5119_v34 = vpop.f32.mrf.mxu2 }
 0x2fc   : > { %v2549_v56 = vsel %vm2546_vm3, %v2548_v21, %v2544_v46  ;;  %3791 = vrcp.f32 %v2338_v24  ;;  %vm2558_vm6 = vmor %vm2556_vm5, %vm2557_vm4  ;;  %v1814_v50 = vadd.f32 %v5069_v45, %v1725_v2  ;;  %v2577_v51 = vand.u32 2147483648, %v2338_v24 }
 0x2fd   : > { %v2848_v3 = vmul.f32 %v2549_v56, %v1898_v19  ;;  %v2553_v9 = vsub.f32 1.0, %v2552_v49  ;;  %v2575_v60 = vand.u32 2147483647, %v2338_v24  ;;  %vm2571_vm9 = vweird.f32 %v2338_v24  ;;  %v5125_v49 = vpop.f32.mrf.mxu3 }
 0x2fe   : > { %v1903_v58 = vadd.f32 %v5075_v59, %v1814_v50  ;;  %v2578_v45 = vor.u32 1.1754944e-38, %v2577_v51  ;;  %v1727_v22 = vadd.f32 %v5078_v40, %v4739_v47  ;;  %v5128_v40 = vpop.f32.mrf.mxu1 }
 0x2ff   : > { %2880 = vst [vmem:[%s4966_s13 + $0x60] sm:$0xff] %v2848_v3  ;;  %v2554_v17 = vmul.f32 %v3788_v55, %v2553_v9  ;;  %vm2576_vm11 = vcmp.eq.f32.partialorder %v2575_v60, 8.507059e+37 }
 0x300   : > { %v2188_v63 = vpop.f32.mrf.mxu0  ;;  %v1816_v21 = vadd.f32 %v5082_v7, %v1727_v22 }
 0x301   : > { %v3790_v5 = vpop.eup %3789  ;;  %v2555_v32 = vadd.f32 %v3788_v55, %v2554_v17  ;;  %v3491_v30 = vmul.f32 -1.442695, %v2188_v63  ;;  %v1730_v63 = vadd.f32 %v5092_v16, %v4752_v44 }
 0x302   : > { %v3792_v11 = vpop.eup %3791  ;;  %v2339_v0 = vadd.f32 1.0, %v3790_v5  ;;  %v1905_v47 = vadd.f32 %v5088_v48, %v1816_v21  ;;  %v5301_v21 = vld [vmem:[#allocation22_spill] sm:$0xff] }
 0x303   : > { %v2559_v20 = vsel %vm2558_vm6, %v3788_v55, %v2555_v32  ;;  %v2567_v61 = vmul.f32 %v3792_v11, %v2338_v24  ;;  %3793 = vpow2.f32 %v3491_v30  ;;  %vm2572_vm8 = vweird.f32 %v3792_v11  ;;  %v5132_v5 = vpop.f32.mrf.mxu2 }
 0x304   : > { %v2564_v62 = vsel %vm2561_vm7, %v2563_v13, %v2559_v20  ;;  %3795 = vrcp.f32 %v2339_v0  ;;  %vm2573_vm10 = vmor %vm2571_vm9, %vm2572_vm8  ;;  %v2592_v59 = vand.u32 2147483648, %v2339_v0  ;;  %v2590_v46 = vand.u32 2147483647, %v2339_v0 }
 0x305   : > { %v2849_v10 = vmul.f32 %v2564_v62, %v1900_v31  ;;  %v2568_v12 = vsub.f32 1.0, %v2567_v61  ;;  %vm2586_vm13 = vweird.f32 %v2339_v0  ;;  %v1819_v48 = vadd.f32 %v5095_v38, %v1730_v63  ;;  %v5137_v16 = vpop.f32.mrf.mxu3 }
 0x306   : > { %v2593_v7 = vor.u32 1.1754944e-38, %v2592_v59  ;;  %vm2591_vm15 = vcmp.eq.f32.partialorder %v2590_v46, 8.507059e+37  ;;  %v5141_v60 = vpop.f32.mrf.mxu1  ;;  %v1735_v59 = vadd.f32 %v5116_v14, %v5301_v21 }
 0x307   : > { %2881 = vst [vmem:[%s4966_s13 + $0x68] sm:$0xff] %v2849_v10  ;;  %v2569_v35 = vmul.f32 %v3792_v11, %v2568_v12  ;;  %v1908_v44 = vadd.f32 %v5101_v41, %v1819_v48 }
 0x308   : > { %v2190_v39 = vpop.f32.mrf.mxu0 }
 0x309   : > { %v3794_v28 = vpop.eup %3793  ;;  %v2570_v57 = vadd.f32 %v3792_v11, %v2569_v35  ;;  %v3492_v26 = vmul.f32 -1.442695, %v2190_v39  ;;  %v1732_v35 = vadd.f32 %v5104_v15, %v4760_v23 }
 0x30a   : > { %v3796_v37 = vpop.eup %3795  ;;  %v2340_v27 = vadd.f32 1.0, %v3794_v28 }
 0x30b   : > { %v2574_v42 = vsel %vm2573_vm10, %v3792_v11, %v2570_v57  ;;  %v2582_v6 = vmul.f32 %v3796_v37, %v2339_v0  ;;  %3797 = vpow2.f32 %v3492_v26  ;;  %vm2587_vm12 = vweird.f32 %v3796_v37  ;;  %v5144_v26 = vpop.f32.mrf.mxu2 }
 0x30c   : > { %v2579_v29 = vsel %vm2576_vm11, %v2578_v45, %v2574_v42  ;;  %3799 = vrcp.f32 %v2340_v27  ;;  %vm2588_vm14 = vmor %vm2586_vm13, %vm2587_vm12  ;;  %v2607_v31 = vand.u32 2147483648, %v2340_v27  ;;  %v2605_v0 = vand.u32 2147483647, %v2340_v27 }
 0x30d   : > { %v2850_v55 = vmul.f32 %v2579_v29, %v1903_v58  ;;  %v2583_v19 = vsub.f32 1.0, %v2582_v6  ;;  %vm2601_vm1 = vweird.f32 %v2340_v27  ;;  %v1821_v41 = vadd.f32 %v5107_v54, %v1732_v35 }
 0x30e   : > { %v2608_v12 = vor.u32 1.1754944e-38, %v2607_v31  ;;  %vm2606_vm3 = vcmp.eq.f32.partialorder %v2605_v0, 8.507059e+37  ;;  %v5302_v31 = vld [vmem:[#allocation23_spill] sm:$0xff] }
 0x30f   : > { %2882 = vst [vmem:[%s4966_s13 + $0x70] sm:$0xff] %v2850_v55  ;;  %v2584_v24 = vmul.f32 %v3796_v37, %v2583_v19  ;;  %v1910_v22 = vadd.f32 %v5113_v1, %v1821_v41  ;;  %v5153_v1 = vpop.f32.mrf.mxu1 }
 0x310   : > { %v2193_v52 = vpop.f32.mrf.mxu0 }
 0x311   : > { %v3798_v56 = vpop.eup %3797  ;;  %v2585_v3 = vadd.f32 %v3796_v37, %v2584_v24  ;;  %v3493_v9 = vmul.f32 -1.442695, %v2193_v52  ;;  %v5150_v24 = vpop.f32.mrf.mxu3 }
 0x312   : > { %v3800_v53 = vpop.eup %3799  ;;  %v2341_v33 = vadd.f32 1.0, %v3798_v56 }
 0x313   : > { %v2589_v17 = vsel %vm2588_vm14, %v3796_v37, %v2585_v3  ;;  %v2597_v25 = vmul.f32 %v3800_v53, %v2340_v27  ;;  %3801 = vpow2.f32 %v3493_v9  ;;  %vm2602_vm0 = vweird.f32 %v3800_v53 }
 0x314   : > { %v2594_v32 = vsel %vm2591_vm15, %v2593_v7, %v2589_v17  ;;  %3803 = vrcp.f32 %v2341_v33  ;;  %vm2603_vm2 = vmor %vm2601_vm1, %vm2602_vm0  ;;  %v2622_v37 = vand.u32 2147483648, %v2341_v33  ;;  %v2620_v45 = vand.u32 2147483647, %v2341_v33  ;;  %v5156_v7 = vpop.f32.mrf.mxu2 }
 0x315   : > { %v2851_v30 = vmul.f32 %v2594_v32, %v1905_v47  ;;  %v2598_v11 = vsub.f32 1.0, %v2597_v25  ;;  %vm2616_vm5 = vweird.f32 %v2341_v33  ;;  %v1824_v3 = vadd.f32 %v5119_v34, %v1735_v59 }
 0x316   : > { %v2623_v29 = vor.u32 1.1754944e-38, %v2622_v37  ;;  %vm2621_vm7 = vcmp.eq.f32.partialorder %v2620_v45, 8.507059e+37 }
 0x317   : > { %2883 = vst [vmem:[%s4966_s13 + $0x78] sm:$0xff] %v2851_v30  ;;  %v2599_v13 = vmul.f32 %v3800_v53, %v2598_v11  ;;  %v1913_v32 = vadd.f32 %v5125_v49, %v1824_v3 }
 0x318   : > { %v2195_v20 = vpop.f32.mrf.mxu0 }
 0x319   : > { %v3802_v61 = vpop.eup %3801  ;;  %v2600_v2 = vadd.f32 %v3800_v53, %v2599_v13  ;;  %v3494_v62 = vmul.f32 -1.442695, %v2195_v20  ;;  %v1737_v13 = vadd.f32 %v5128_v40, %v5302_v31 }
 0x31a   : > { %v3804_v10 = vpop.eup %3803  ;;  %v2342_v50 = vadd.f32 1.0, %v3802_v61 }
 0x31b   : > { %v2604_v38 = vsel %vm2603_vm2, %v3800_v53, %v2600_v2  ;;  %v2612_v51 = vmul.f32 %v3804_v10, %v2341_v33  ;;  %3805 = vpow2.f32 %v3494_v62  ;;  %vm2617_vm4 = vweird.f32 %v3804_v10  ;;  %v5162_v62 = vpop.f32.mrf.mxu3 }
 0x31c   : > { %v2609_v39 = vsel %vm2606_vm3, %v2608_v12, %v2604_v38  ;;  %3807 = vrcp.f32 %v2342_v50  ;;  %vm2618_vm6 = vmor %vm2616_vm5, %vm2617_vm4  ;;  %v2637_v9 = vand.u32 2147483648, %v2342_v50  ;;  %v2635_v47 = vand.u32 2147483647, %v2342_v50  ;;  %v5165_v12 = vpop.f32.mrf.mxu1 }
 0x31d   : > { %v2852_v28 = vmul.f32 %v2609_v39, %v1908_v44  ;;  %v2613_v57 = vsub.f32 1.0, %v2612_v51  ;;  %vm2631_vm9 = vweird.f32 %v2342_v50  ;;  %v1826_v2 = vadd.f32 %v5132_v5, %v1737_v13 }
 0x31e   : > { %v2638_v34 = vor.u32 1.1754944e-38, %v2637_v9  ;;  %vm2636_vm11 = vcmp.eq.f32.partialorder %v2635_v47, 8.507059e+37 }
 0x31f   : > { %2884 = vst [vmem:[%s4966_s13 + $0x80] sm:$0xff] %v2852_v28  ;;  %v2614_v58 = vmul.f32 %v3804_v10, %v2613_v57  ;;  %v1915_v39 = vadd.f32 %v5137_v16, %v1826_v2  ;;  %v5168_v28 = vpop.f32.mrf.mxu2 }
 0x320   : > { %v2198_v27 = vpop.f32.mrf.mxu0 }
 0x321   : > { %v3806_v42 = vpop.eup %3805  ;;  %v2615_v6 = vadd.f32 %v3804_v10, %v2614_v58  ;;  %v3495_v23 = vmul.f32 -1.442695, %v2198_v27  ;;  %v1740_v58 = vadd.f32 %v5141_v60, %v4794_v18 }
 0x322   : > { %v3808_v15 = vpop.eup %3807  ;;  %v2343_v55 = vadd.f32 1.0, %v3806_v42 }
 0x323   : > { %v2619_v54 = vsel %vm2618_vm6, %v3804_v10, %v2615_v6  ;;  %v2627_v19 = vmul.f32 %v3808_v15, %v2342_v50  ;;  %3809 = vpow2.f32 %v3495_v23  ;;  %vm2632_vm8 = vweird.f32 %v3808_v15 }
 0x324   : > { %v2624_v46 = vsel %vm2621_vm7, %v2623_v29, %v2619_v54  ;;  %3811 = vrcp.f32 %v2343_v55  ;;  %vm2633_vm10 = vmor %vm2631_vm9, %vm2632_vm8  ;;  %v2652_v49 = vand.u32 2147483648, %v2343_v55  ;;  %v2650_v44 = vand.u32 2147483647, %v2343_v55  ;;  %v1746_v60 = vpop.f32.mrf.mxu1 }
 0x325   : > { %v2853_v52 = vmul.f32 %v2624_v46, %v1910_v22  ;;  %v2628_v56 = vsub.f32 1.0, %v2627_v19  ;;  %vm2646_vm13 = vweird.f32 %v2343_v55  ;;  %v1829_v6 = vadd.f32 %v5144_v26, %v1740_v58  ;;  %v1922_v22 = vpop.f32.mrf.mxu3  ;;  %v5304_v58 = vld [vmem:[#allocation28_spill] sm:$0xff] }
 0x326   : > { %v2653_v5 = vor.u32 1.1754944e-38, %v2652_v49  ;;  %vm2651_vm15 = vcmp.eq.f32.partialorder %v2650_v44, 8.507059e+37 }
 0x327   : > { %2885 = vst [vmem:[%s4966_s13 + $0x88] sm:$0xff] %v2853_v52  ;;  %v2629_v53 = vmul.f32 %v3808_v15, %v2628_v56  ;;  %v1918_v18 = vadd.f32 %v5150_v24, %v1829_v6  ;;  %v5303_v56 = vld [vmem:[#allocation24_spill] sm:$0xff]  ;;  %v1835_v9 = vpop.f32.mrf.mxu2 }
 0x328   : > { %v2200_v33 = vpop.f32.mrf.mxu0  ;;  %v1742_v3 = vadd.f32 %v5153_v1, %v5303_v56 }
 0x329   : > { %v3810_v17 = vpop.eup %3809  ;;  %v2630_v14 = vadd.f32 %v3808_v15, %v2629_v53  ;;  %v3496_v25 = vmul.f32 -1.442695, %v2200_v33 }
 0x32a   : > { %v3812_v63 = vpop.eup %3811  ;;  %v2344_v30 = vadd.f32 1.0, %v3810_v17  ;;  %v1831_v17 = vadd.f32 %v5156_v7, %v1742_v3 }
 0x32b   : > { %v2634_v11 = vsel %vm2633_vm10, %v3808_v15, %v2630_v14  ;;  %v2642_v48 = vmul.f32 %v3812_v63, %v2343_v55  ;;  %3813 = vpow2.f32 %v3496_v25  ;;  %vm2647_vm12 = vweird.f32 %v3812_v63 }
 0x32c   : > { %v2639_v0 = vsel %vm2636_vm11, %v2638_v34, %v2634_v11  ;;  %3815 = vrcp.f32 %v2344_v30  ;;  %vm2648_vm14 = vmor %vm2646_vm13, %vm2647_vm12  ;;  %v2667_v16 = vand.u32 2147483648, %v2344_v30  ;;  %v2665_v15 = vand.u32 2147483647, %v2344_v30 }
 0x32d   : > { %v2854_v20 = vmul.f32 %v2639_v0, %v1913_v32  ;;  %v2643_v61 = vsub.f32 1.0, %v2642_v48  ;;  %vm2661_vm1 = vweird.f32 %v2344_v30  ;;  %v1920_v1 = vadd.f32 %v5162_v62, %v1831_v17  ;;  %v1924_v48 = vpop.f32.mrf.mxu3 }
 0x32e   : > { %v2668_v59 = vor.u32 1.1754944e-38, %v2667_v16  ;;  %vm2666_vm3 = vcmp.eq.f32.partialorder %v2665_v15, 8.507059e+37 }
 0x32f   : > { %2886 = vst [vmem:[%s4966_s13 + $0x90] sm:$0xff] %v2854_v20  ;;  %v2644_v10 = vmul.f32 %v3812_v63, %v2643_v61  ;;  %v1745_v20 = vadd.f32 %v5165_v12, %v4815_v36  ;;  %v1749_v61 = vpop.f32.mrf.mxu1  ;;  %v1838_v62 = vpop.f32.mrf.mxu2 }
 0x330   : > { %v2203_v50 = vpop.f32.mrf.mxu0 }
 0x331   : > { %v3814_v38 = vpop.eup %3813  ;;  %v2645_v51 = vadd.f32 %v3812_v63, %v2644_v10  ;;  %v3497_v40 = vmul.f32 -1.442695, %v2203_v50  ;;  %v1834_v44 = vadd.f32 %v5168_v28, %v1745_v20 }
 0x332   : > { %v3816_v35 = vpop.eup %3815  ;;  %v2345_v57 = vadd.f32 1.0, %v3814_v38 }
 0x333   : > { %v2649_v41 = vsel %vm2648_vm14, %v3812_v63, %v2645_v51  ;;  %v2657_v37 = vmul.f32 %v3816_v35, %v2344_v30  ;;  %3817 = vpow2.f32 %v3497_v40  ;;  %vm2662_vm0 = vweird.f32 %v3816_v35 }
 0x334   : > { %v2654_v45 = vsel %vm2651_vm15, %v2653_v5, %v2649_v41  ;;  %3819 = vrcp.f32 %v2345_v57  ;;  %vm2663_vm2 = vmor %vm2661_vm1, %vm2662_vm0  ;;  %v2682_v24 = vand.u32 2147483648, %v2345_v57  ;;  %v2680_v25 = vand.u32 2147483647, %v2345_v57 }
 0x335   : > { %v2855_v27 = vmul.f32 %v2654_v45, %v1915_v39  ;;  %v2658_v42 = vsub.f32 1.0, %v2657_v37  ;;  %vm2676_vm5 = vweird.f32 %v2345_v57  ;;  %v1923_v36 = vadd.f32 %v1922_v22, %v1834_v44 }
 0x336   : > { %v2683_v31 = vor.u32 1.1754944e-38, %v2682_v24  ;;  %vm2681_vm7 = vcmp.eq.f32.partialorder %v2680_v25, 8.507059e+37  ;;  %v1747_v45 = vadd.f32 %v1746_v60, %v5304_v58  ;;  %v5305_v58 = vld [vmem:[#allocation26_spill] sm:$0xff] }
 0x337   : > { %2887 = vst [vmem:[%s4966_s13 + $0x98] sm:$0xff] %v2855_v27  ;;  %v2659_v23 = vmul.f32 %v3816_v35, %v2658_v42  ;;  %v1927_v27 = vpop.f32.mrf.mxu3  ;;  %v1751_v15 = vpop.f32.mrf.mxu1 }
 0x338   : > { %v2205_v29 = vpop.f32.mrf.mxu0 }
 0x339   : > { %v3818_v55 = vpop.eup %3817  ;;  %v2660_v54 = vadd.f32 %v3816_v35, %v2659_v23  ;;  %v3498_v19 = vmul.f32 -1.442695, %v2205_v29  ;;  %v1836_v23 = vadd.f32 %v1835_v9, %v1747_v45  ;;  %v1750_v9 = vadd.f32 %v1749_v61, %v4836_v8 }
 0x33a   : > { %v3820_v21 = vpop.eup %3819  ;;  %v2346_v46 = vadd.f32 1.0, %v3818_v55  ;;  %v1752_v61 = vadd.f32 %v1751_v15, %v4842_v4 }
 0x33b   : > { %v2664_v26 = vsel %vm2663_vm2, %v3816_v35, %v2660_v54  ;;  %v2672_v52 = vmul.f32 %v3820_v21, %v2345_v57  ;;  %3821 = vpow2.f32 %v3498_v19  ;;  %vm2677_vm4 = vweird.f32 %v3820_v21  ;;  %v1840_v54 = vpop.f32.mrf.mxu2 }
 0x33c   : > { %v2669_v53 = vsel %vm2666_vm3, %v2668_v59, %v2664_v26  ;;  %3823 = vrcp.f32 %v2346_v46  ;;  %vm2678_vm6 = vmor %vm2676_vm5, %vm2677_vm4  ;;  %v2697_v50 = vand.u32 2147483648, %v2346_v46  ;;  %v2695_v51 = vand.u32 2147483647, %v2346_v46 }
 0x33d   : > { %v2856_v47 = vmul.f32 %v2669_v53, %v1918_v18  ;;  %v2673_v33 = vsub.f32 1.0, %v2672_v52  ;;  %vm2691_vm9 = vweird.f32 %v2346_v46  ;;  %v1925_v60 = vadd.f32 %v1924_v48, %v1836_v23 }
 0x33e   : > { %v2698_v12 = vor.u32 1.1754944e-38, %v2697_v50  ;;  %vm2696_vm11 = vcmp.eq.f32.partialorder %v2695_v51, 8.507059e+37  ;;  %v1839_v17 = vadd.f32 %v1838_v62, %v1750_v9  ;;  %v1841_v44 = vadd.f32 %v1840_v54, %v1752_v61 }
 0x33f   : > { %2888 = vst [vmem:[%s4966_s13 + $0xa0] sm:$0xff] %v2856_v47  ;;  %v2674_v14 = vmul.f32 %v3820_v21, %v2673_v33  ;;  %v1929_v24 = vpop.f32.mrf.mxu3 }
 0x340   : > { %v2208_v63 = vpop.f32.mrf.mxu0 }
 0x341   : > { %v3822_v32 = vpop.eup %3821  ;;  %v2675_v34 = vadd.f32 %v3820_v21, %v2674_v14  ;;  %v3499_v30 = vmul.f32 -1.442695, %v2208_v63 }
 0x342   : > { %v3824_v11 = vpop.eup %3823  ;;  %v2347_v13 = vadd.f32 1.0, %v3822_v32  ;;  %v1754_v32 = vpop.f32.mrf.mxu1 }
 0x343   : > { %v2679_v0 = vsel %vm2678_vm6, %v3820_v21, %v2675_v34  ;;  %v2687_v7 = vmul.f32 %v3824_v11, %v2346_v46  ;;  %3825 = vpow2.f32 %v3499_v30  ;;  %vm2692_vm8 = vweird.f32 %v3824_v11  ;;  %v1843_v8 = vpop.f32.mrf.mxu2 }
 0x344   : > { %v2684_v2 = vsel %vm2681_vm7, %v2683_v31, %v2679_v0  ;;  %3827 = vrcp.f32 %v2347_v13  ;;  %vm2693_vm10 = vmor %vm2691_vm9, %vm2692_vm8  ;;  %v2712_v29 = vand.u32 2147483648, %v2347_v13  ;;  %v2710_v55 = vand.u32 2147483647, %v2347_v13 }
 0x345   : > { %v2857_v49 = vmul.f32 %v2684_v2, %v1920_v1  ;;  %v2688_v10 = vsub.f32 1.0, %v2687_v7  ;;  %vm2706_vm13 = vweird.f32 %v2347_v13  ;;  %v1928_v31 = vadd.f32 %v1927_v27, %v1839_v17 }
 0x346   : > { %v2713_v26 = vor.u32 1.1754944e-38, %v2712_v29  ;;  %vm2711_vm15 = vcmp.eq.f32.partialorder %v2710_v55, 8.507059e+37  ;;  %v1755_v45 = vadd.f32 %v1754_v32, %v5305_v58  ;;  %v5307_v58 = vld [vmem:[#allocation30_spill] sm:$0xff] }
 0x347   : > { %2889 = vst [vmem:[%s4966_s13 + $0xa8] sm:$0xff] %v2857_v49  ;;  %v2689_v38 = vmul.f32 %v3824_v11, %v2688_v10  ;;  %v1932_v51 = vpop.f32.mrf.mxu3 }
 0x348   : > { %v2210_v40 = vpop.f32.mrf.mxu0  ;;  %v1844_v23 = vadd.f32 %v1843_v8, %v1755_v45 }
 0x349   : > { %v3826_v35 = vpop.eup %3825  ;;  %v2690_v39 = vadd.f32 %v3824_v11, %v2689_v38  ;;  %v3500_v5 = vmul.f32 -1.442695, %v2210_v40 }
 0x34a   : > { %v3828_v57 = vpop.eup %3827  ;;  %v2348_v41 = vadd.f32 1.0, %v3826_v35 }
 0x34b   : > { %v2694_v37 = vsel %vm2693_vm10, %v3824_v11, %v2690_v39  ;;  %v2702_v28 = vmul.f32 %v3828_v57, %v2347_v13  ;;  %3829 = vpow2.f32 %v3500_v5  ;;  %vm2707_vm12 = vweird.f32 %v3828_v57  ;;  %v1845_v27 = vpop.f32.mrf.mxu2 }
 0x34c   : > { %v2699_v42 = vsel %vm2696_vm11, %v2698_v12, %v2694_v37  ;;  %3831 = vrcp.f32 %v2348_v41  ;;  %vm2708_vm14 = vmor %vm2706_vm13, %vm2707_vm12  ;;  %v2727_v14 = vand.u32 2147483648, %v2348_v41  ;;  %v2725_v63 = vand.u32 2147483647, %v2348_v41  ;;  %v1756_v12 = vpop.f32.mrf.mxu1 }
 0x34d   : > { %v2858_v6 = vmul.f32 %v2699_v42, %v1923_v36  ;;  %v2703_v16 = vsub.f32 1.0, %v2702_v28  ;;  %vm2721_vm1 = vweird.f32 %v2348_v41  ;;  %v1930_v36 = vadd.f32 %v1929_v24, %v1841_v44 }
 0x34e   : > { %v2728_v13 = vor.u32 1.1754944e-38, %v2727_v14  ;;  %vm2726_vm3 = vcmp.eq.f32.partialorder %v2725_v63, 8.507059e+37 }
 0x34f   : > { %2890 = vst [vmem:[%s4966_s13 + $0xb0] sm:$0xff] %v2858_v6  ;;  %v2704_v22 = vmul.f32 %v3828_v57, %v2703_v16 }
 0x350   : > { %v2213_v19 = vpop.f32.mrf.mxu0 }
 0x351   : > { %v3830_v21 = vpop.eup %3829  ;;  %v2705_v18 = vadd.f32 %v3828_v57, %v2704_v22  ;;  %v3501_v59 = vmul.f32 -1.442695, %v2213_v19 }
 0x352   : > { %v3832_v46 = vpop.eup %3831  ;;  %v2349_v52 = vadd.f32 1.0, %v3830_v21 }
 0x353   : > { %v2709_v56 = vsel %vm2708_vm14, %v3828_v57, %v2705_v18  ;;  %v2717_v3 = vmul.f32 %v3832_v46, %v2348_v41  ;;  %3833 = vpow2.f32 %v3501_v59  ;;  %vm2722_vm0 = vweird.f32 %v3832_v46  ;;  %v1848_v14 = vpop.f32.mrf.mxu2 }
 0x354   : > { %v2714_v53 = vsel %vm2711_vm15, %v2713_v26, %v2709_v56  ;;  %3835 = vrcp.f32 %v2349_v52  ;;  %vm2723_vm2 = vmor %vm2721_vm1, %vm2722_vm0  ;;  %v2742_v62 = vand.u32 2147483648, %v2349_v52  ;;  %v2740_v38 = vand.u32 2147483647, %v2349_v52 }
 0x355   : > { %v2859_v47 = vmul.f32 %v2714_v53, %v1925_v60  ;;  %v2718_v33 = vsub.f32 1.0, %v2717_v3  ;;  %vm2736_vm5 = vweird.f32 %v2349_v52  ;;  %v1933_v59 = vadd.f32 %v1932_v51, %v1844_v23  ;;  %v5306_v3 = vld [vmem:[#allocation27_spill] sm:$0xff]  ;;  %v1759_v53 = vpop.f32.mrf.mxu1 }
 0x356   : > { %v2743_v4 = vor.u32 1.1754944e-38, %v2742_v62  ;;  %vm2741_vm7 = vcmp.eq.f32.partialorder %v2740_v38, 8.507059e+37  ;;  %v1757_v9 = vadd.f32 %v1756_v12, %v5306_v3 }
 0x357   : > { %2891 = vst [vmem:[%s4966_s13 + $0xb8] sm:$0xff] %v2859_v47  ;;  %v2719_v25 = vmul.f32 %v3832_v46, %v2718_v33 }
 0x358   : > { %v2215_v34 = vpop.f32.mrf.mxu0  ;;  %v1846_v24 = vadd.f32 %v1845_v27, %v1757_v9 }
 0x359   : > { %v3834_v30 = vpop.eup %3833  ;;  %v2720_v11 = vadd.f32 %v3832_v46, %v2719_v25  ;;  %v3502_v1 = vmul.f32 -1.442695, %v2215_v34 }
 0x35a   : > { %v3836_v48 = vpop.eup %3835  ;;  %v2350_v0 = vadd.f32 1.0, %v3834_v30 }
 0x35b   : > { %v2724_v7 = vsel %vm2723_vm2, %v3832_v46, %v2720_v11  ;;  %v2732_v20 = vmul.f32 %v3836_v48, %v2349_v52  ;;  %3837 = vpow2.f32 %v3502_v1  ;;  %vm2737_vm4 = vweird.f32 %v3836_v48  ;;  %v1934_v46 = vpop.f32.mrf.mxu3 }
 0x35c   : > { %v2729_v2 = vsel %vm2726_vm3, %v2728_v13, %v2724_v7  ;;  %3839 = vrcp.f32 %v2350_v0  ;;  %vm2738_vm6 = vmor %vm2736_vm5, %vm2737_vm4  ;;  %v2757_v15 = vand.u32 2147483648, %v2350_v0  ;;  %v2755_v22 = vand.u32 2147483647, %v2350_v0 }
 0x35d   : > { %v2860_v49 = vmul.f32 %v2729_v2, %v1928_v31  ;;  %v2733_v10 = vsub.f32 1.0, %v2732_v20  ;;  %vm2751_vm9 = vweird.f32 %v2350_v0  ;;  %v1935_v31 = vadd.f32 %v1934_v46, %v1846_v24  ;;  %v1761_v62 = vpop.f32.mrf.mxu1 }
 0x35e   : > { %v2758_v60 = vor.u32 1.1754944e-38, %v2757_v15  ;;  %vm2756_vm11 = vcmp.eq.f32.partialorder %v2755_v22, 8.507059e+37  ;;  %v1760_v20 = vadd.f32 %v1759_v53, %v4878_v43  ;;  %v1762_v45 = vadd.f32 %v1761_v62, %v5307_v58 }
 0x35f   : > { %2892 = vst [vmem:[%s4966_s13 + $0xc0] sm:$0xff] %v2860_v49  ;;  %v2734_v50 = vmul.f32 %v3836_v48, %v2733_v10 }
 0x360   : > { %v2218_v40 = vpop.f32.mrf.mxu0  ;;  %v1849_v44 = vadd.f32 %v1848_v14, %v1760_v20 }
 0x361   : > { %v3838_v35 = vpop.eup %3837  ;;  %v2735_v39 = vadd.f32 %v3836_v48, %v2734_v50  ;;  %v3503_v5 = vmul.f32 -1.442695, %v2218_v40  ;;  %v1850_v40 = vpop.f32.mrf.mxu2 }
 0x362   : > { %v3840_v57 = vpop.eup %3839  ;;  %v2351_v41 = vadd.f32 1.0, %v3838_v35  ;;  %v1851_v23 = vadd.f32 %v1850_v40, %v1762_v45 }
 0x363   : > { %v2739_v37 = vsel %vm2738_vm6, %v3836_v48, %v2735_v39  ;;  %v2747_v28 = vmul.f32 %v3840_v57, %v2350_v0  ;;  %3841 = vpow2.f32 %v3503_v5  ;;  %vm2752_vm8 = vweird.f32 %v3840_v57  ;;  %v1937_v61 = vpop.f32.mrf.mxu3 }
 0x364   : > { %v2744_v42 = vsel %vm2741_vm7, %v2743_v4, %v2739_v37  ;;  %3843 = vrcp.f32 %v2351_v41  ;;  %vm2753_vm10 = vmor %vm2751_vm9, %vm2752_vm8  ;;  %v2772_v25 = vand.u32 2147483648, %v2351_v41  ;;  %v2770_v32 = vand.u32 2147483647, %v2351_v41 }
 0x365   : > { %v2861_v6 = vmul.f32 %v2744_v42, %v1930_v36  ;;  %v2748_v16 = vsub.f32 1.0, %v2747_v28  ;;  %vm2766_vm13 = vweird.f32 %v2351_v41  ;;  %v1938_v43 = vadd.f32 %v1937_v61, %v1849_v44  ;;  %v1764_v22 = vpop.f32.mrf.mxu1 }
 0x366   : > { %v2773_v8 = vor.u32 1.1754944e-38, %v2772_v25  ;;  %vm2771_vm15 = vcmp.eq.f32.partialorder %v2770_v32, 8.507059e+37 }
 0x367   : > { %2893 = vst [vmem:[%s4966_s13 + $0xc8] sm:$0xff] %v2861_v6  ;;  %v2749_v29 = vmul.f32 %v3840_v57, %v2748_v16 }
 0x368   : > { %v2220_v55 = vpop.f32.mrf.mxu0 }
 0x369   : > { %v3842_v54 = vpop.eup %3841  ;;  %v2750_v19 = vadd.f32 %v3840_v57, %v2749_v29  ;;  %v3504_v21 = vmul.f32 -1.442695, %v2220_v55 }
 0x36a   : > { %v3844_v18 = vpop.eup %3843  ;;  %v2352_v26 = vadd.f32 1.0, %v3842_v54 }
 0x36b   : > { %v2754_v52 = vsel %vm2753_vm10, %v3840_v57, %v2750_v19  ;;  %v2762_v56 = vmul.f32 %v3844_v18, %v2351_v41  ;;  %3845 = vpow2.f32 %v3504_v21  ;;  %vm2767_vm12 = vweird.f32 %v3844_v18  ;;  %v1939_v6 = vpop.f32.mrf.mxu3  ;;  %v1853_v21 = vpop.f32.mrf.mxu2 }
 0x36c   : > { %v2759_v47 = vsel %vm2756_vm11, %v2758_v60, %v2754_v52  ;;  %3847 = vrcp.f32 %v2352_v26  ;;  %vm2768_vm14 = vmor %vm2766_vm13, %vm2767_vm12  ;;  %v2787_v50 = vand.u32 2147483648, %v2352_v26  ;;  %v2785_v51 = vand.u32 2147483647, %v2352_v26 }
 0x36d   : > { %v2862_v33 = vmul.f32 %v2759_v47, %v1933_v59  ;;  %v2763_v17 = vsub.f32 1.0, %v2762_v56  ;;  %vm2781_vm1 = vweird.f32 %v2352_v26  ;;  %v1940_v46 = vadd.f32 %v1939_v6, %v1851_v23  ;;  %v5308_v56 = vld [vmem:[#allocation31_spill] sm:$0xff]  ;;  %v1766_v32 = vpop.f32.mrf.mxu1 }
 0x36e   : > { %v2788_v12 = vor.u32 1.1754944e-38, %v2787_v50  ;;  %vm2786_vm3 = vcmp.eq.f32.partialorder %v2785_v51, 8.507059e+37  ;;  %v1765_v3 = vadd.f32 %v1764_v22, %v5308_v56 }
 0x36f   : > { %2894 = vst [vmem:[%s4966_s13 + $0xd0] sm:$0xff] %v2862_v33  ;;  %v2764_v63 = vmul.f32 %v3844_v18, %v2763_v17 }
 0x370   : > { %v2223_v34 = vpop.f32.mrf.mxu0  ;;  %v1854_v33 = vadd.f32 %v1853_v21, %v1765_v3 }
 0x371   : > { %v3846_v30 = vpop.eup %3845  ;;  %v2765_v11 = vadd.f32 %v3844_v18, %v2764_v63  ;;  %v3505_v1 = vmul.f32 -1.442695, %v2223_v34 }
 0x372   : > { %v3848_v48 = vpop.eup %3847  ;;  %v2353_v13 = vadd.f32 1.0, %v3846_v30 }
 0x373   : > { %v2769_v0 = vsel %vm2768_vm14, %v3844_v18, %v2765_v11  ;;  %v2777_v7 = vmul.f32 %v3848_v48, %v2352_v26  ;;  %3849 = vpow2.f32 %v3505_v1  ;;  %vm2782_vm0 = vweird.f32 %v3848_v48  ;;  %v1942_v14 = vpop.f32.mrf.mxu3 }
 0x374   : > { %v2774_v2 = vsel %vm2771_vm15, %v2773_v8, %v2769_v0  ;;  %3851 = vrcp.f32 %v2353_v13  ;;  %vm2783_vm2 = vmor %vm2781_vm1, %vm2782_vm0  ;;  %v2802_v16 = vand.u32 2147483648, %v2353_v13  ;;  %v2800_v29 = vand.u32 2147483647, %v2353_v13  ;;  %v5309_v8 = vld [vmem:[#allocation32_spill] sm:$0xff] }
 0x375   : > { %v2863_v49 = vmul.f32 %v2774_v2, %v1935_v31  ;;  %v2778_v10 = vsub.f32 1.0, %v2777_v7  ;;  %vm2796_vm5 = vweird.f32 %v2353_v13  ;;  %v1943_v30 = vadd.f32 %v1942_v14, %v1854_v33 }
 0x376   : > { %v2803_v18 = vor.u32 1.1754944e-38, %v2802_v16  ;;  %vm2801_vm7 = vcmp.eq.f32.partialorder %v2800_v29, 8.507059e+37 }
 0x377   : > { %2895 = vst [vmem:[%s4966_s13 + $0xd8] sm:$0xff] %v2863_v49  ;;  %v2779_v38 = vmul.f32 %v3848_v48, %v2778_v10 }
 0x378   : > { %v2225_v35 = vpop.f32.mrf.mxu0 }
 0x379   : > { %v3850_v39 = vpop.eup %3849  ;;  %v2780_v5 = vadd.f32 %v3848_v48, %v2779_v38  ;;  %v3506_v57 = vmul.f32 -1.442695, %v2225_v35 }
 0x37a   : > { %v3852_v36 = vpop.eup %3851  ;;  %v2354_v4 = vadd.f32 1.0, %v3850_v39 }
 0x37b   : > { %v2784_v41 = vsel %vm2783_vm2, %v3848_v48, %v2780_v5  ;;  %v2792_v37 = vmul.f32 %v3852_v36, %v2353_v13  ;;  %3853 = vpow2.f32 %v3506_v57  ;;  %vm2797_vm4 = vweird.f32 %v3852_v36  ;;  %v1855_v48 = vpop.f32.mrf.mxu2  ;;  %v1944_v44 = vpop.f32.mrf.mxu3 }
 0x37c   : > { %v2789_v28 = vsel %vm2786_vm3, %v2788_v12, %v2784_v41  ;;  %3855 = vrcp.f32 %v2354_v4  ;;  %vm2798_vm6 = vmor %vm2796_vm5, %vm2797_vm4  ;;  %v2817_v47 = vand.u32 2147483648, %v2354_v4  ;;  %v2815_v24 = vand.u32 2147483647, %v2354_v4 }
 0x37d   : > { %v2864_v27 = vmul.f32 %v2789_v28, %v1938_v43  ;;  %v2793_v42 = vsub.f32 1.0, %v2792_v37  ;;  %vm2811_vm9 = vweird.f32 %v2354_v4  ;;  %v1767_v13 = vadd.f32 %v1766_v32, %v5309_v8 }
 0x37e   : > { %v2818_v34 = vor.u32 1.1754944e-38, %v2817_v47  ;;  %vm2816_vm11 = vcmp.eq.f32.partialorder %v2815_v24, 8.507059e+37 }
 0x37f   : > { %2896 = vst [vmem:[%s4966_s13 + $0xe0] sm:$0xff] %v2864_v27  ;;  %v2794_v15 = vmul.f32 %v3852_v36, %v2793_v42  ;;  %v1856_v61 = vadd.f32 %v1855_v48, %v1767_v13 }
 0x381   : > { %v3854_v55 = vpop.eup %3853  ;;  %v2795_v54 = vadd.f32 %v3852_v36, %v2794_v15  ;;  %v1945_v50 = vadd.f32 %v1944_v44, %v1856_v61 }
 0x382   : > { %v3856_v19 = vpop.eup %3855  ;;  %v2355_v59 = vadd.f32 1.0, %v3854_v55 }
 0x383   : > { %v2799_v60 = vsel %vm2798_vm6, %v3852_v36, %v2795_v54  ;;  %v2807_v26 = vmul.f32 %v3856_v19, %v2354_v4  ;;  %vm2812_vm8 = vweird.f32 %v3856_v19 }
 0x384   : > { %v2804_v52 = vsel %vm2801_vm7, %v2803_v18, %v2799_v60  ;;  %3857 = vrcp.f32 %v2355_v59  ;;  %vm2813_vm10 = vmor %vm2811_vm9, %vm2812_vm8  ;;  %v2832_v20 = vand.u32 2147483648, %v2355_v59  ;;  %v2830_v49 = vand.u32 2147483647, %v2355_v59 }
 0x385   : > { %v2865_v9 = vmul.f32 %v2804_v52, %v1940_v46  ;;  %v2808_v53 = vsub.f32 1.0, %v2807_v26  ;;  %vm2826_vm13 = vweird.f32 %v2355_v59 }
 0x386   : > { %v2833_v62 = vor.u32 1.1754944e-38, %v2832_v20  ;;  %vm2831_vm15 = vcmp.eq.f32.partialorder %v2830_v49, 8.507059e+37 }
 0x387   : > { %2897 = vst [vmem:[%s4966_s13 + $0xe8] sm:$0xff] %v2865_v9  ;;  %v2809_v17 = vmul.f32 %v3856_v19, %v2808_v53 }
 0x389   : > { %v2810_v25 = vadd.f32 %v3856_v19, %v2809_v17 }
 0x38a   : > { %v3858_v63 = vpop.eup %3857 }
 0x38b   : > { %v2814_v11 = vsel %vm2813_vm10, %v3856_v19, %v2810_v25  ;;  %v2822_v1 = vmul.f32 %v3858_v63, %v2355_v59  ;;  %vm2827_vm12 = vweird.f32 %v3858_v63 }
 0x38c   : > { %v2819_v31 = vsel %vm2816_vm11, %v2818_v34, %v2814_v11  ;;  %vm2828_vm14 = vmor %vm2826_vm13, %vm2827_vm12 }
 0x38d   : > { %v2866_v0 = vmul.f32 %v2819_v31, %v1943_v30  ;;  %v2823_v7 = vsub.f32 1.0, %v2822_v1 }
 0x38f   : > { %2898 = vst [vmem:[%s4966_s13 + $0xf0] sm:$0xff] %v2866_v0  ;;  %v2824_v2 = vmul.f32 %v3858_v63, %v2823_v7 }
 0x391   : > { %v2825_v10 = vadd.f32 %v3858_v63, %v2824_v2 }
 0x393   : > { %v2829_v38 = vsel %vm2828_vm14, %v3858_v63, %v2825_v10 }
 0x394   : > { %v2834_v51 = vsel %vm2831_vm15, %v2833_v62, %v2829_v38 }
 0x395   : > { %v2867_v40 = vmul.f32 %v2834_v51, %v1945_v50 }
 0x397   : > { %2899 = vst [vmem:[%s4966_s13 + $0xf8] sm:$0xff] %v2867_v40 }
 0x398   : > { %4036 = shalt.err (!%p4033_p11)
}
 0x399   : > { %s4096_s23 = smov 128   ;;  %s4097_s2 = smov 8  }
 0x39a   : > { %3659 = dma.vmem_to_hbm [thread:$0]  (%p4217_p7), %s2914_s22, 4096, %s2916_s6, %s2901_s17, %s4096_s23, %s4096_s23, %s4097_s2  }
 0x39b PF: > { %s2930_s29 = sand.u32 1, %s4075_s18   ;;  %p5310_p12 = scmp.ge.s32.totalorder %s4087_s21, 2 }
 0x39c   : > { %s2931_s28 = scalar_lea.sflag [#allocation4], %s2930_s29 }
 0x39d   : > { %p3679_p13 = pnand %p5310_p12, %p4163_p6 }
 0x39f   : > { %p3680_p0 = pneg %p3679_p13 }
 0x3a1   : > { %4070 = dma.done.wait (%p3680_p0), %s2931_s28, 4096  }
 0x3a2   : > { %4072 = vsyncadd (%p3680_p0), %s2931_s28, 4294963200  ;;  %p22_p3 = scmp.ge.s32.totalorder %s4203_s30, 4   ;;  %s5311_s18 = smov %s4079_s19 }
 0x3a3   : > { %s5312_s19 = smov %s4083_s20  ;;  %s5313_s20 = smov %s4213_s9 }
 0x3a4   : > { %s5314_s21 = smov %s4203_s30  ;;  %24 = sbr.rel (!%p22_p3) target bundleno = 12 (0xc), region = 110 }
 0x3a9   :  { %2937 = vsyncpa [#allocation3], 1 }
 0x3aa   :  { %2939 = vsyncpa [#allocation3 + $0x1], 1 }
 0x3ab   :  { %2940 = vsyncpa [#allocation6], 1 }
 0x3ac   :  { %2942 = vsyncpa [#allocation6 + $0x1], 1 }
 0x3ad   :  { %2943 = vsyncpa [#allocation9], 1 }
 0x3ae   :  { %2944 = vsyncpa [#allocation4], 1 }
 0x3af   :  { %2946 = vsyncpa [#allocation4 + $0x1], 1 }

</bundles_post_ra>
